<compile_context>
chip_gen: v5e
topology: v5e:2x2
jax: 0.10.0
libtpu: 0.0.40
codegen_flags: <defaults>
</compile_context>

<pallas_src>
import functools

import jax
import jax.numpy as jnp
from jax.experimental import pallas as pl
from jax.experimental.pallas import tpu as pltpu


def _round_up(n, m):
    return ((n + m - 1) // m) * m


# ---------------------------------------------------------------------------
# Kernel
# ---------------------------------------------------------------------------
def _ae_kernel(layer_meta, sigmoid, compute_dtype,
               x_ref, w_ref, b_ref, out_ref):
    """One batch tile through all 8 linear layers.

    layer_meta: tuple of (row_offset, w_in, w_out, apply_relu), all static,
                with w_in/w_out already padded to multiples of 128.
    w_ref: packed (rows, L) weight slab in compute_dtype (VMEM resident).
    b_ref: packed (8, L) bias slab in float32 (VMEM resident).
    """
    h = x_ref[...]                                   # (TB, 128-padded), compute_dtype
    n_layers = len(layer_meta)
    for idx, (row_off, w_in, w_out, relu) in enumerate(layer_meta):
        w = w_ref[row_off:row_off + w_in, 0:w_out]   # static, tile-aligned slice
        b = b_ref[idx:idx + 1, 0:w_out]              # (1, w_out) f32
        acc = jnp.dot(h, w, preferred_element_type=jnp.float32) + b
        if relu:
            acc = jnp.maximum(acc, 0.0)
        if idx == n_layers - 1:
            if sigmoid:                              # static flag -> EUP path
                acc = jax.nn.sigmoid(acc)
            out_ref[...] = acc.astype(out_ref.dtype)
        else:
            h = acc.astype(compute_dtype)            # no-op for f32


# ---------------------------------------------------------------------------
# Parameter packing: 16 small tensors -> one weight slab + one bias slab,
# every layer block padded to (128k, 128m) so in-kernel slices are vreg tiles.
# ---------------------------------------------------------------------------
def pack_ae_params(params, compute_dtype=jnp.float32, lane_align=128):
    """params: list of (W(in,out) f32, b(out,) f32), 8 layers.

    Returns (w_slab[compute_dtype], b_slab[f32], layer_meta)."""
    n = len(params)
    lanes = max(_round_up(w.shape[1], lane_align) for w, _ in params)

    metas = []
    rows = 0
    for idx, (w, _) in enumerate(params):
        d_in, d_out = w.shape
        w_in = _round_up(d_in, lane_align)
        w_out = _round_up(d_out, lane_align)
        relu = idx not in (3, n - 1)   # last encoder / last decoder layer: no relu
        metas.append((rows, w_in, w_out, relu))
        rows += w_in

    w_slab = jnp.zeros((rows, lanes), compute_dtype)
    b_slab = jnp.zeros((_round_up(n, 8), lanes), jnp.float32)
    for idx, ((w, b), (off, _, _, _)) in enumerate(zip(params, metas)):
        d_in, d_out = w.shape
        w_slab = w_slab.at[off:off + d_in, 0:d_out].set(w.astype(compute_dtype))
        b_slab = b_slab.at[idx, 0:d_out].set(
            jnp.reshape(b, (-1,)).astype(jnp.float32))
    return w_slab, b_slab, tuple(metas)


# ---------------------------------------------------------------------------
# Forward wrapper
# ---------------------------------------------------------------------------
@functools.partial(jax.jit,
                   static_argnames=("layer_meta", "sigmoid", "block_b"))
def ae_forward_packed(x, w_slab, b_slab, layer_meta, *, sigmoid=False,
                      block_b=1024):
    B, x_dim = x.shape
    compute_dtype = w_slab.dtype
    Dp = _round_up(x_dim, 128)                       # lane-padded feature width

    # Batch tile: multiple of 16 sublanes (bf16-friendly), capped by block_b.
    tb = min(_round_up(block_b, 16), _round_up(B, 16))
    Bp = _round_up(B, tb)

    x_c = x.astype(compute_dtype)
    if (Bp, Dp) != (B, x_dim):
        x_c = jnp.pad(x_c, ((0, Bp - B), (0, Dp - x_dim)))

    grid = Bp // tb
    kernel = functools.partial(_ae_kernel, layer_meta, sigmoid, compute_dtype)

    out = pl.pallas_call(
        kernel,
        out_shape=jax.ShapeDtypeStruct((Bp, Dp), jnp.float32),
        grid_spec=pltpu.PrefetchScalarGridSpec(
            num_scalar_prefetch=0,
            grid=(grid,),
            in_specs=[
                pl.BlockSpec((tb, Dp), lambda i: (i, 0)),      # streamed x tile
                pl.BlockSpec(w_slab.shape, lambda i: (0, 0)),  # VMEM resident
                pl.BlockSpec(b_slab.shape, lambda i: (0, 0)),  # VMEM resident
            ],
            out_specs=pl.BlockSpec((tb, Dp), lambda i: (i, 0)),
        ),
        compiler_params=pltpu.CompilerParams(
            dimension_semantics=("parallel",)),                # megacore on v7x
    )(x_c, w_slab, b_slab)

    if (Bp, Dp) != (B, x_dim):
        out = out[:B, :x_dim]
    return out


def ae_forward(x, params, *, sigmoid=False, compute_dtype=jnp.float32,
               block_b=1024):
    w_slab, b_slab, layer_meta = pack_ae_params(params, compute_dtype)
    return ae_forward_packed(x, w_slab, b_slab, layer_meta,
                             sigmoid=sigmoid, block_b=block_b)


# ---------------------------------------------------------------------------
# Init + reference
# ---------------------------------------------------------------------------
def init_linear(key, in_features, out_features):
    """Matches PyTorch nn.Linear default init (uniform +-1/sqrt(fan_in))."""
    kw, kb = jax.random.split(key)
    bound = 1.0 / jnp.sqrt(jnp.float32(in_features))
    w = jax.random.uniform(kw, (in_features, out_features), jnp.float32,
                           -bound, bound)
    b = jax.random.uniform(kb, (out_features,), jnp.float32, -bound, bound)
    return w, b


def build_ae_params(key, x_dim, h1, h2, h3, h4):
    dims_enc = [(x_dim, h1), (h1, h2), (h2, h3), (h3, h4)]   # encoder fc1..fc4
    dims_dec = [(h4, h3), (h3, h2), (h2, h1), (h1, x_dim)]   # decoder fc4..fc1
    keys = jax.random.split(key, 8)
    return [init_linear(k, i, o) for k, (i, o) in zip(keys, dims_enc + dims_dec)]


def ae_reference(x, params, *, sigmoid=False, compute_dtype=jnp.float32):
    """Plain-JAX reference mirroring the kernel's dtype handling."""
    h = x.astype(compute_dtype)
    n = len(params)
    for idx, (w, b) in enumerate(params):
        acc = jnp.dot(h, w.astype(compute_dtype),
                      preferred_element_type=jnp.float32)
        acc = acc + jnp.reshape(b, (1, -1)).astype(jnp.float32)
        if idx not in (3, n - 1):
            acc = jnp.maximum(acc, 0.0)
        if idx == n - 1:
            if sigmoid:
                acc = jax.nn.sigmoid(acc)
            return acc.astype(jnp.float32)
        h = acc.astype(compute_dtype)


# ---------------------------------------------------------------------------
# Self-test
# ---------------------------------------------------------------------------
if __name__ == "__main__":
    x_dim, h1, h2, h3, h4 = 128, 64, 32, 16, 8
    key = jax.random.PRNGKey(0)
    k_x1, k_x2, k_p = jax.random.split(key, 3)
    params = build_ae_params(k_p, x_dim, h1, h2, h3, h4)

    # --- Test 1: f32 compute, multi-step batch grid (grid=(2,)) ---
    B1 = 256
    x1 = jax.random.normal(k_x1, (B1, x_dim), dtype=jnp.float32)
    out1 = jax.block_until_ready(
        ae_forward(x1, params, sigmoid=False,
                   compute_dtype=jnp.float32, block_b=128))
    ref1 = ae_reference(x1, params, sigmoid=False, compute_dtype=jnp.float32)
    assert out1.shape == (B1, x_dim)
    assert jnp.allclose(out1, ref1, atol=1e-4, rtol=1e-4), \
        "f32 mismatch vs reference"

    # --- Test 2: bf16 compute, ragged batch (padding path), sigmoid head ---
    B2 = 200
    x2 = jax.random.normal(k_x2, (B2, x_dim), dtype=jnp.float32)
    out2 = jax.block_until_ready(
        ae_forward(x2, params, sigmoid=True,
                   compute_dtype=jnp.bfloat16, block_b=128))
    ref2 = ae_reference(x2, params, sigmoid=True, compute_dtype=jnp.bfloat16)
    assert out2.shape == (B2, x_dim)
    assert jnp.allclose(out2, ref2, atol=1e-2, rtol=1e-2), \
        "bf16 mismatch vs reference"

    print("KERNEL_OK")
</pallas_src>

<mosaic_0001>
module attributes {stable_mosaic.version = 11 : i64} {
  func.func @_ae_kernel(%arg0: i32, %arg1: memref<128x128xf32, #tpu.memory_space<vmem>>, %arg2: memref<1024x128xf32, #tpu.memory_space<vmem>>, %arg3: memref<8x128xf32, #tpu.memory_space<vmem>>, %arg4: memref<128x128xf32, #tpu.memory_space<vmem>>) attributes {dimension_semantics = [#tpu.dimension_semantics<parallel>], iteration_bounds = array<i64: 2>, scalar_prefetch = 0 : i64, scratch_operands = 0 : i64, tpu.core_type = #tpu.core_type<tc>, window_params = [{transform_indices = @transform_0, window_bounds = array<i64: 128, 128>}, {pipeline_mode = #tpu.pipeline_mode<synchronous>, transform_indices = @transform_1, window_bounds = array<i64: 1024, 128>}, {pipeline_mode = #tpu.pipeline_mode<synchronous>, transform_indices = @transform_2, window_bounds = array<i64: 8, 128>}, {transform_indices = @transform_3, window_bounds = array<i64: 128, 128>}]} {
    %c0 = arith.constant 0 : index
    %c0_0 = arith.constant 0 : index
    %0 = vector.load %arg1[%c0, %c0_0] : memref<128x128xf32, #tpu.memory_space<vmem>>, vector<128x128xf32>
    %c0_1 = arith.constant 0 : index
    %c0_2 = arith.constant 0 : index
    %1 = vector.load %arg2[%c0_1, %c0_2] : memref<1024x128xf32, #tpu.memory_space<vmem>>, vector<128x128xf32>
    %c0_3 = arith.constant 0 : index
    %c0_4 = arith.constant 0 : index
    %2 = vector.load %arg3[%c0_3, %c0_4] : memref<8x128xf32, #tpu.memory_space<vmem>>, vector<1x128xf32>
    %cst = arith.constant dense<0.000000e+00> : vector<128x128xf32>
    %3 = tpu.matmul %0, %1, %cst {dimension_numbers = #tpu.dot_dimension_numbers<[1], [0], [0], [1], [0, 0, 1, 1], [], []>} : vector<128x128xf32>, vector<128x128xf32>, vector<128x128xf32> -> vector<128x128xf32>
    %4 = vector.broadcast %2 : vector<1x128xf32> to vector<128x128xf32>
    %5 = arith.addf %3, %4 : vector<128x128xf32>
    %cst_5 = arith.constant 0.000000e+00 : f32
    %6 = vector.broadcast %cst_5 : f32 to vector<128x128xf32>
    %7 = arith.maximumf %5, %6 : vector<128x128xf32>
    %c128 = arith.constant 128 : index
    %c0_6 = arith.constant 0 : index
    %8 = vector.load %arg2[%c128, %c0_6] : memref<1024x128xf32, #tpu.memory_space<vmem>>, vector<128x128xf32>
    %c1 = arith.constant 1 : index
    %c0_7 = arith.constant 0 : index
    %9 = vector.load %arg3[%c1, %c0_7] : memref<8x128xf32, #tpu.memory_space<vmem>>, vector<1x128xf32>
    %cst_8 = arith.constant dense<0.000000e+00> : vector<128x128xf32>
    %10 = tpu.matmul %7, %8, %cst_8 {dimension_numbers = #tpu.dot_dimension_numbers<[1], [0], [0], [1], [0, 0, 1, 1], [], []>} : vector<128x128xf32>, vector<128x128xf32>, vector<128x128xf32> -> vector<128x128xf32>
    %11 = vector.broadcast %9 : vector<1x128xf32> to vector<128x128xf32>
    %12 = arith.addf %10, %11 : vector<128x128xf32>
    %cst_9 = arith.constant 0.000000e+00 : f32
    %13 = vector.broadcast %cst_9 : f32 to vector<128x128xf32>
    %14 = arith.maximumf %12, %13 : vector<128x128xf32>
    %c256 = arith.constant 256 : index
    %c0_10 = arith.constant 0 : index
    %15 = vector.load %arg2[%c256, %c0_10] : memref<1024x128xf32, #tpu.memory_space<vmem>>, vector<128x128xf32>
    %c2 = arith.constant 2 : index
    %c0_11 = arith.constant 0 : index
    %16 = vector.load %arg3[%c2, %c0_11] : memref<8x128xf32, #tpu.memory_space<vmem>>, vector<1x128xf32>
    %cst_12 = arith.constant dense<0.000000e+00> : vector<128x128xf32>
    %17 = tpu.matmul %14, %15, %cst_12 {dimension_numbers = #tpu.dot_dimension_numbers<[1], [0], [0], [1], [0, 0, 1, 1], [], []>} : vector<128x128xf32>, vector<128x128xf32>, vector<128x128xf32> -> vector<128x128xf32>
    %18 = vector.broadcast %16 : vector<1x128xf32> to vector<128x128xf32>
    %19 = arith.addf %17, %18 : vector<128x128xf32>
    %cst_13 = arith.constant 0.000000e+00 : f32
    %20 = vector.broadcast %cst_13 : f32 to vector<128x128xf32>
    %21 = arith.maximumf %19, %20 : vector<128x128xf32>
    %c384 = arith.constant 384 : index
    %c0_14 = arith.constant 0 : index
    %22 = vector.load %arg2[%c384, %c0_14] : memref<1024x128xf32, #tpu.memory_space<vmem>>, vector<128x128xf32>
    %c3 = arith.constant 3 : index
    %c0_15 = arith.constant 0 : index
    %23 = vector.load %arg3[%c3, %c0_15] : memref<8x128xf32, #tpu.memory_space<vmem>>, vector<1x128xf32>
    %cst_16 = arith.constant dense<0.000000e+00> : vector<128x128xf32>
    %24 = tpu.matmul %21, %22, %cst_16 {dimension_numbers = #tpu.dot_dimension_numbers<[1], [0], [0], [1], [0, 0, 1, 1], [], []>} : vector<128x128xf32>, vector<128x128xf32>, vector<128x128xf32> -> vector<128x128xf32>
    %25 = vector.broadcast %23 : vector<1x128xf32> to vector<128x128xf32>
    %26 = arith.addf %24, %25 : vector<128x128xf32>
    %c512 = arith.constant 512 : index
    %c0_17 = arith.constant 0 : index
    %27 = vector.load %arg2[%c512, %c0_17] : memref<1024x128xf32, #tpu.memory_space<vmem>>, vector<128x128xf32>
    %c4 = arith.constant 4 : index
    %c0_18 = arith.constant 0 : index
    %28 = vector.load %arg3[%c4, %c0_18] : memref<8x128xf32, #tpu.memory_space<vmem>>, vector<1x128xf32>
    %cst_19 = arith.constant dense<0.000000e+00> : vector<128x128xf32>
    %29 = tpu.matmul %26, %27, %cst_19 {dimension_numbers = #tpu.dot_dimension_numbers<[1], [0], [0], [1], [0, 0, 1, 1], [], []>} : vector<128x128xf32>, vector<128x128xf32>, vector<128x128xf32> -> vector<128x128xf32>
    %30 = vector.broadcast %28 : vector<1x128xf32> to vector<128x128xf32>
    %31 = arith.addf %29, %30 : vector<128x128xf32>
    %cst_20 = arith.constant 0.000000e+00 : f32
    %32 = vector.broadcast %cst_20 : f32 to vector<128x128xf32>
    %33 = arith.maximumf %31, %32 : vector<128x128xf32>
    %c640 = arith.constant 640 : index
    %c0_21 = arith.constant 0 : index
    %34 = vector.load %arg2[%c640, %c0_21] : memref<1024x128xf32, #tpu.memory_space<vmem>>, vector<128x128xf32>
    %c5 = arith.constant 5 : index
    %c0_22 = arith.constant 0 : index
    %35 = vector.load %arg3[%c5, %c0_22] : memref<8x128xf32, #tpu.memory_space<vmem>>, vector<1x128xf32>
    %cst_23 = arith.constant dense<0.000000e+00> : vector<128x128xf32>
    %36 = tpu.matmul %33, %34, %cst_23 {dimension_numbers = #tpu.dot_dimension_numbers<[1], [0], [0], [1], [0, 0, 1, 1], [], []>} : vector<128x128xf32>, vector<128x128xf32>, vector<128x128xf32> -> vector<128x128xf32>
    %37 = vector.broadcast %35 : vector<1x128xf32> to vector<128x128xf32>
    %38 = arith.addf %36, %37 : vector<128x128xf32>
    %cst_24 = arith.constant 0.000000e+00 : f32
    %39 = vector.broadcast %cst_24 : f32 to vector<128x128xf32>
    %40 = arith.maximumf %38, %39 : vector<128x128xf32>
    %c768 = arith.constant 768 : index
    %c0_25 = arith.constant 0 : index
    %41 = vector.load %arg2[%c768, %c0_25] : memref<1024x128xf32, #tpu.memory_space<vmem>>, vector<128x128xf32>
    %c6 = arith.constant 6 : index
    %c0_26 = arith.constant 0 : index
    %42 = vector.load %arg3[%c6, %c0_26] : memref<8x128xf32, #tpu.memory_space<vmem>>, vector<1x128xf32>
    %cst_27 = arith.constant dense<0.000000e+00> : vector<128x128xf32>
    %43 = tpu.matmul %40, %41, %cst_27 {dimension_numbers = #tpu.dot_dimension_numbers<[1], [0], [0], [1], [0, 0, 1, 1], [], []>} : vector<128x128xf32>, vector<128x128xf32>, vector<128x128xf32> -> vector<128x128xf32>
    %44 = vector.broadcast %42 : vector<1x128xf32> to vector<128x128xf32>
    %45 = arith.addf %43, %44 : vector<128x128xf32>
    %cst_28 = arith.constant 0.000000e+00 : f32
    %46 = vector.broadcast %cst_28 : f32 to vector<128x128xf32>
    %47 = arith.maximumf %45, %46 : vector<128x128xf32>
    %c896 = arith.constant 896 : index
    %c0_29 = arith.constant 0 : index
    %48 = vector.load %arg2[%c896, %c0_29] : memref<1024x128xf32, #tpu.memory_space<vmem>>, vector<128x128xf32>
    %c7 = arith.constant 7 : index
    %c0_30 = arith.constant 0 : index
    %49 = vector.load %arg3[%c7, %c0_30] : memref<8x128xf32, #tpu.memory_space<vmem>>, vector<1x128xf32>
    %cst_31 = arith.constant dense<0.000000e+00> : vector<128x128xf32>
    %50 = tpu.matmul %47, %48, %cst_31 {dimension_numbers = #tpu.dot_dimension_numbers<[1], [0], [0], [1], [0, 0, 1, 1], [], []>} : vector<128x128xf32>, vector<128x128xf32>, vector<128x128xf32> -> vector<128x128xf32>
    %51 = vector.broadcast %49 : vector<1x128xf32> to vector<128x128xf32>
    %52 = arith.addf %50, %51 : vector<128x128xf32>
    %c0_32 = arith.constant 0 : index
    %c0_33 = arith.constant 0 : index
    %53 = vector.load %arg4[%c0_32, %c0_33] : memref<128x128xf32, #tpu.memory_space<vmem>>, vector<128x128xf32>
    tpu.vector_store %arg4[%c0_32, %c0_33], %52 {strides = array<i32>} : memref<128x128xf32, #tpu.memory_space<vmem>>, vector<128x128xf32>,
    return
  }
  func.func @transform_0(%arg0: i32) -> (i32, i32) {
    %c0_i32 = arith.constant 0 : i32
    %c0_i32_0 = arith.constant 0 : i32
    return %arg0, %c0_i32 : i32, i32
  }
  func.func @transform_1(%arg0: i32) -> (i32, i32) {
    %c0_i32 = arith.constant 0 : i32
    %c0_i32_0 = arith.constant 0 : i32
    %c0_i32_1 = arith.constant 0 : i32
    return %c0_i32, %c0_i32_0 : i32, i32
  }
  func.func @transform_2(%arg0: i32) -> (i32, i32) {
    %c0_i32 = arith.constant 0 : i32
    %c0_i32_0 = arith.constant 0 : i32
    %c0_i32_1 = arith.constant 0 : i32
    return %c0_i32, %c0_i32_0 : i32, i32
  }
  func.func @transform_3(%arg0: i32) -> (i32, i32) {
    %c0_i32 = arith.constant 0 : i32
    %c0_i32_0 = arith.constant 0 : i32
    return %arg0, %c0_i32 : i32, i32
  }
}

</mosaic_0001>

<bundles_post_ra>
// kernel: ae_forward_packed.1
= control target key start
LH: loop header
LB: loop body
LE: loop exit
PB: predicated region body
PF: predicated region fallthrough
CT: control target
= control target key end

     0   :  { %8 = vsyncpa [#allocation3], 0  ;;  %s1707_s0 = inlined_call_operand.hbm [shape: f32[256,128], index: 0, kind: input, shape index: {}]   ;;  %s1708_s1 = inlined_call_operand.hbm [shape: f32[1024,128], index: 1, kind: input, shape index: {}]   ;;  %s1709_s2 = inlined_call_operand.hbm [shape: f32[8,128], index: 2, kind: input, shape index: {}]   ;;  %s1710_s3 = inlined_call_operand.hbm [shape: f32[256,128], index: 3, kind: output, shape index: {}]  }
   0x1   :  { %10 = vsyncpa [#allocation3 + $0x1], 0 }
   0x2   :  { %11 = vsyncpa [#allocation6], 0 }
   0x3   :  { %12 = vsyncpa [#allocation4], 0 }
   0x4   :  { %14 = vsyncpa [#allocation4 + $0x1], 0  ;;  %s1411_s12 = smov 0   ;;  %s1413_s13 = smov 0  }
   0x5   :  { %s1415_s14 = smov 0   ;;  %s1417_s15 = smov 0  }
   0x6 LB: > { %s1432_s16 = sadd.s32 4294967295, %s1383_s15   ;;  %s1124_s17 = sadd.s32 4294967294, %s1383_s15   ;;  %s1383_s15 = sphi %s1417_s15, %s1720_s15   ;;  %s1379_s14 = sphi %s1415_s14, %s1719_s14   ;;  %s1375_s13 = sphi %s1413_s13, %s1718_s13   ;;  %s1371_s12 = sphi %s1411_s12, %s1717_s12  }
   0x7   : > { %p40_p0 = scmp.ne.s32.totalorder %s1375_s13, %s1371_s12  ;;  %p41_p1 = scmp.eq.s32.totalorder %s1432_s16, 0 }
   0x8   : > { %p106_p2 = scmp.eq.s32.totalorder %s1432_s16, 1  ;;  %p112_p3 = scmp.eq.s32.totalorder %s1124_s17, 1 }
   0x9   : > { %p1441_p4 = por %p41_p1, %p40_p0  ;;  %p1125_p5 = scmp.ge.s32.totalorder %s1383_s15, 1 }
   0xa   : > { %p1446_p6 = por %p112_p3, %p40_p0  ;;  %p119_p7 = scmp.lt.s32.totalorder %s1383_s15, 3 }
   0xb   : > { %s130_s22 = sshll.u32 %s1708_s1, 4  ;;  %s1385_s24 = smov [#allocation5]   ;;  %s131_s22 = int_to_ptr.hbm [resolvable:$true] %s130_s22 }
   0xc   : > { %p1454_p8 = pnand %p1125_p5, %p119_p7  ;;  %s132_s25 = sshll.u32 %s1385_s24, 4  ;;  %s133_s25 = int_to_ptr.vmem [resolvable:$true] %s132_s25 }
   0xd   : > { %s145_s28 = sshll.u32 %s1709_s2, 4  ;;  %s1386_s29 = smov 128   ;;  %s146_s28 = int_to_ptr.hbm [resolvable:$true] %s145_s28 }
   0xe   : > { %p1156_p9 = pneg %p1454_p8  ;;  %s1387_s30 = smov 8  }
   0xf   : > { %s1388_s4 = smov [#allocation7]   ;;  %s1470_s6 = sadd.s32 1, %s1383_s15  }
  0x10   : > { %p1157_p10 = pnand %p1156_p9, %p41_p1  ;;  %s147_s5 = sshll.u32 %s1388_s4, 4  ;;  %s148_s5 = int_to_ptr.vmem [resolvable:$true] %s147_s5 }
  0x11   : > { %s27_s7 = sadd.s32 1, %s1379_s14  ;;  %s24_s8 = ssub.s32 %s1383_s15, %s1470_s6 }
  0x12   : > { %1159 = dma.hbm_to_vmem [thread:$0]  (!%p1157_p10), %s131_s22, 16384, %s133_s25, [#allocation6], %s1386_s29, %s1386_s29, %s1387_s30  }
  0x13   : > { %1162 = dma.hbm_to_vmem [thread:$0]  (!%p1157_p10), %s146_s28, 128, %s148_s5, [#allocation6]  }
  0x14   : > { %p34_p12 = scmp.ne.s32.totalorder %s1379_s14, %s1375_s13  ;;  %p25_p13 = scmp.eq.s32.totalorder %s24_s8, 0 }
  0x15   : > { %p35_p0 = scmp.eq.s32.totalorder %s1383_s15, 0  ;;  %p1173_p5 = scmp.lt.s32.totalorder %s1383_s15, 2 }
  0x16   : > { %p1480_p3 = por %p106_p2, %p34_p12  ;;  %s158_s11 = sand.u32 1, %s1379_s14  }
  0x17   : > { %s1486_s10 = scalar_select %p25_p13, %s1379_s14, %s27_s7  }
  0x18   : > { %p36_p7 = por %p35_p0, %p34_p12  ;;  %s1129_s17 = sshll.u32 %s158_s11, 7 }
  0x19   : > { %s1142_s20 = sshll.u32 %s1383_s15, 7  ;;  %s162_s25 = scalar_lea.vmem [#allocation2], %s1129_s17 }
  0x1a   : > { %s167_s24 = scalar_lea.hbm %s1707_s0, %s1142_s20  ;;  %s170_s26 = sshll.u32 %s162_s25, 4  ;;  %s171_s26 = int_to_ptr.vmem [resolvable:$true] %s170_s26 }
  0x1b   : > { %s168_s27 = sshll.u32 %s167_s24, 4  ;;  %p1493_p2 = pnand %p1173_p5, %p36_p7  ;;  %s169_s27 = int_to_ptr.hbm [resolvable:$true] %s168_s27 }
  0x1c   : > { %s159_s4 = scalar_lea.sflag [#allocation3], %s158_s11  ;;  %s1283_s5 = sshra.s32 %s169_s27, 4  ;;  %s1284_s5 = int_to_ptr.hbm [resolvable:$true] %s1283_s5 }
  0x1d   : > { %s1285_s7 = scalar_lea.hbm %s1284_s5, 128  ;;  %p1287_p10 = pneg %p1493_p2 }
  0x1e   : > { %p1286_p9 = scmp.ne.s32.totalorder %s1284_s5, %s1285_s7  ;;  %s1290_s20 = scalar_lea.hbm %s1707_s0, 256 }
  0x1f   : > { %p1291_p0 = scmp.lt.s32.totalorder %s1284_s5, %s1707_s0  ;;  %p1292_p5 = scmp.lt.s32.totalorder %s1290_s20, %s1285_s7 }
  0x20   : > { %p1288_p12 = pnand %p1287_p10, %p1286_p9 }
  0x21   : > { %p1293_p7 = por %p1292_p5, %p1291_p0 }
  0x22   : > { %p1289_p13 = pneg %p1288_p12 }
  0x24   : > { %p1294_p11 = pnand %p1293_p7, %p1289_p13 }
  0x26   : > { %1297 = shalt.err (!%p1294_p11)
}
  0x27   : > { %1166 = dma.hbm_to_vmem [thread:$0]  (!%p1493_p2), %s169_s27, 2048, %s171_s26, %s159_s4, %s1386_s29, %s1386_s29, %s1387_s30  }
  0x28   : > { %182 = sbr.rel (%p1454_p8) target bundleno = 1264 (0x4f0), region = 32  ;;  %s1513_s11 = sand.u32 (!%p1454_p8), 1, %s1375_s13  }
  0x29   : > { %s1133_s24 = sshll.u32 (!%p1454_p8), %s1513_s11, 7  ;;  %s185_s25 = scalar_lea.sflag (!%p1454_p8), [#allocation3], %s1513_s11 }
  0x2a   : > { %s1519_s5 = scalar_lea.vmem (!%p1454_p8), [#allocation2], %s1133_s24 }
  0x2d   : > { %1358 = dma.done.wait (%p1441_p4), %s185_s25, 2048  }
  0x2e   : > { %1360 = vsyncadd (%p1441_p4), %s185_s25, 4294965248 }
  0x2f   : > { %1362 = dma.done.wait (%p41_p1), [#allocation6], 16512  }
  0x30   : > { %1364 = vsyncadd (%p41_p1), [#allocation6], 4294950784  ;;  %v255_v0 = vld [vmem:[#allocation5 + $0x78] sm:$0xff]  ;;  %v254_v1 = vld [vmem:[#allocation5 + $0x70] sm:$0xff]  ;;  %s1655_s18 = scalar_lea.vmem [#allocation8], %s1133_s24  ;;  %s1143_s23 = sshll.u32 %s1432_s16, 7 }
  0x31   : > { %258 = vmatpush.msra.mxu0 %v255_v0  ;;  %v253_v2 = vld [vmem:[#allocation5 + $0x68] sm:$0xff]  ;;  %v252_v3 = vld [vmem:[#allocation5 + $0x60] sm:$0xff]  ;;  %v251_v4 = vld [vmem:[#allocation5 + $0x58] sm:$0xff]  ;;  %s1028_s26 = scalar_lea.hbm %s1710_s3, %s1143_s23  ;;  %s1029_s27 = sshll.u32 %s1655_s18, 4  ;;  %s1030_s27 = int_to_ptr.vmem [resolvable:$true] %s1029_s27 }
  0x32   : > { %v250_v5 = vld [vmem:[#allocation5 + $0x50] sm:$0xff]  ;;  %v249_v6 = vld [vmem:[#allocation5 + $0x48] sm:$0xff]  ;;  %v248_v7 = vld [vmem:[#allocation5 + $0x40] sm:$0xff]  ;;  %s1031_s28 = sshll.u32 %s1028_s26, 4  ;;  %s1017_s4 = scalar_lea.sflag [#allocation4], %s1513_s11  ;;  %s1032_s28 = int_to_ptr.hbm [resolvable:$true] %s1031_s28 }
  0x33   : > { %259 = vmatpush.msra.mxu0 %v254_v1  ;;  %v247_v8 = vld [vmem:[#allocation5 + $0x38] sm:$0xff]  ;;  %v246_v9 = vld [vmem:[#allocation5 + $0x30] sm:$0xff]  ;;  %v245_v10 = vld [vmem:[#allocation5 + $0x28] sm:$0xff]  ;;  %s1327_s7 = sshra.s32 %s1032_s28, 4  ;;  %s1333_s20 = scalar_lea.hbm %s1710_s3, 256  ;;  %s1328_s7 = int_to_ptr.hbm [resolvable:$true] %s1327_s7 }
  0x34   : > { %v244_v11 = vld [vmem:[#allocation5 + $0x20] sm:$0xff]  ;;  %v243_v12 = vld [vmem:[#allocation5 + $0x18] sm:$0xff]  ;;  %v242_v13 = vld [vmem:[#allocation5 + $0x10] sm:$0xff]  ;;  %s1329_s8 = scalar_lea.hbm %s1328_s7, 128  ;;  %p1334_p11 = scmp.lt.s32.totalorder %s1328_s7, %s1710_s3 }
  0x35   : > { %260 = vmatpush.msra.mxu0 %v253_v2  ;;  %v241_v14 = vld [vmem:[#allocation5 + $0x8] sm:$0xff]  ;;  %v240_v15 = vld [vmem:[#allocation5] sm:$0xff]  ;;  %v226_v18 = vld [vmem:[%s1519_s5 + $0x10] sm:$0xff]  ;;  %p1330_p1 = scmp.ne.s32.totalorder %s1328_s7, %s1329_s8  ;;  %p1335_p2 = scmp.lt.s32.totalorder %s1333_s20, %s1329_s8 }
  0x36   : > { %v224_v16 = vld [vmem:[%s1519_s5] sm:$0xff]  ;;  %v225_v17 = vld [vmem:[%s1519_s5 + $0x8] sm:$0xff]  ;;  %v227_v19 = vld [vmem:[%s1519_s5 + $0x18] sm:$0xff] }
  0x37   : > { %261 = vmatpush.msra.mxu0 %v252_v3  ;;  %v228_v20 = vld [vmem:[%s1519_s5 + $0x20] sm:$0xff]  ;;  %v229_v21 = vld [vmem:[%s1519_s5 + $0x28] sm:$0xff]  ;;  %v230_v22 = vld [vmem:[%s1519_s5 + $0x30] sm:$0xff]  ;;  %p1331_p4 = pnand %p1330_p1, %p1480_p3  ;;  %p1336_p9 = por %p1335_p2, %p1334_p11 }
  0x38   : > { %v231_v23 = vld [vmem:[%s1519_s5 + $0x38] sm:$0xff]  ;;  %v232_v24 = vld [vmem:[%s1519_s5 + $0x40] sm:$0xff]  ;;  %v353_v26 = vld [vmem:[#allocation5 + $0xf0] sm:$0xff] }
  0x39   : > { %262 = vmatpush.msra.mxu0 %v251_v4  ;;  %v354_v25 = vld [vmem:[#allocation5 + $0xf8] sm:$0xff]  ;;  %v352_v27 = vld [vmem:[#allocation5 + $0xe8] sm:$0xff]  ;;  %v351_v29 = vld [vmem:[#allocation5 + $0xe0] sm:$0xff]  ;;  %p1332_p8 = pneg %p1331_p4 }
  0x3a   : > { %357 = vmatpush.msra.mxu1 %v354_v25  ;;  %v233_v28 = vld [vmem:[%s1519_s5 + $0x48] sm:$0xff]  ;;  %v350_v30 = vld [vmem:[#allocation5 + $0xd8] sm:$0xff]  ;;  %v349_v31 = vld [vmem:[#allocation5 + $0xd0] sm:$0xff] }
  0x3b   : > { %263 = vmatpush.msra.mxu0 %v250_v5  ;;  %v348_v32 = vld [vmem:[#allocation5 + $0xc8] sm:$0xff]  ;;  %v234_v33 = vld [vmem:[%s1519_s5 + $0x50] sm:$0xff]  ;;  %v347_v34 = vld [vmem:[#allocation5 + $0xc0] sm:$0xff]  ;;  %p1337_p10 = pnand %p1336_p9, %p1332_p8 }
  0x3c   : > { %358 = vmatpush.msra.mxu1 %v353_v26  ;;  %v346_v35 = vld [vmem:[#allocation5 + $0xb8] sm:$0xff]  ;;  %v345_v36 = vld [vmem:[#allocation5 + $0xb0] sm:$0xff]  ;;  %v344_v37 = vld [vmem:[#allocation5 + $0xa8] sm:$0xff] }
  0x3d   : > { %264 = vmatpush.msra.mxu0 %v249_v6  ;;  %v235_v38 = vld [vmem:[%s1519_s5 + $0x58] sm:$0xff]  ;;  %v343_v39 = vld [vmem:[#allocation5 + $0xa0] sm:$0xff]  ;;  %v341_v41 = vld [vmem:[#allocation5 + $0x90] sm:$0xff] }
  0x3e   : > { %359 = vmatpush.msra.mxu1 %v352_v27  ;;  %v342_v40 = vld [vmem:[#allocation5 + $0x98] sm:$0xff]  ;;  %v236_v42 = vld [vmem:[%s1519_s5 + $0x60] sm:$0xff]  ;;  %v340_v43 = vld [vmem:[#allocation5 + $0x88] sm:$0xff] }
  0x3f   : > { %265 = vmatpush.msra.mxu0 %v248_v7  ;;  %v339_v44 = vld [vmem:[#allocation5 + $0x80] sm:$0xff]  ;;  %v237_v45 = vld [vmem:[%s1519_s5 + $0x68] sm:$0xff]  ;;  %v238_v46 = vld [vmem:[%s1519_s5 + $0x70] sm:$0xff] }
  0x40   : > { %360 = vmatpush.msra.mxu1 %v351_v29  ;;  %v239_v47 = vld [vmem:[%s1519_s5 + $0x78] sm:$0xff]  ;;  %v1545_v48 = vld [vmem:[#allocation7] ss:$0 sm:$0xff]  ;;  %v444_v29 = vld [vmem:[#allocation5 + $0x130] sm:$0xff] }
  0x41   : > { %266 = vmatpush.msra.mxu0 %v247_v8  ;;  %v446_v25 = vld [vmem:[#allocation5 + $0x140] sm:$0xff]  ;;  %v445_v26 = vld [vmem:[#allocation5 + $0x138] sm:$0xff] }
  0x42   : > { %361 = vmatpush.msra.mxu1 %v350_v30 }
  0x43   : > { %267 = vmatpush.msra.mxu0 %v246_v9 }
  0x44   : > { %362 = vmatpush.msra.mxu1 %v349_v31  ;;  %v443_v31 = vld [vmem:[#allocation5 + $0x128] sm:$0xff] }
  0x45   : > { %268 = vmatpush.msra.mxu0 %v245_v10 }
  0x46   : > { %363 = vmatpush.msra.mxu1 %v348_v32  ;;  %v442_v32 = vld [vmem:[#allocation5 + $0x120] sm:$0xff] }
  0x47   : > { %269 = vmatpush.msra.mxu0 %v244_v11 }
  0x48   : > { %364 = vmatpush.msra.mxu1 %v347_v34 }
  0x49   : > { %270 = vmatpush.msra.mxu0 %v243_v12  ;;  %v453_v12 = vld [vmem:[#allocation5 + $0x178] sm:$0xff] }
  0x4a   : > { %365 = vmatpush.msra.mxu1 %v346_v35  ;;  %456 = vmatpush.msra.mxu2 %v453_v12 }
  0x4b   : > { %271 = vmatpush.msra.mxu0 %v242_v13 }
  0x4c   : > { %366 = vmatpush.msra.mxu1 %v345_v36  ;;  %v440_v36 = vld [vmem:[#allocation5 + $0x110] sm:$0xff] }
  0x4d   : > { %272 = vmatpush.msra.mxu0 %v241_v14 }
  0x4e   : > { %367 = vmatpush.msra.mxu1 %v344_v37 }
  0x4f   : > { %273 = vmatpush.msra.mxu0 %v240_v15  ;;  %v452_v15 = vld [vmem:[#allocation5 + $0x170] sm:$0xff] }
  0x50   : > { %274 = vmatmul.f32.vlgmr.msra.gmra.mxu0 %v224_v16  ;;  %368 = vmatpush.msra.mxu1 %v343_v39  ;;  %v438_v39 = vld [vmem:[#allocation5 + $0x100] sm:$0xff] }
  0x51   : > { %457 = vmatpush.msra.mxu2 %v452_v15 }
  0x52   : > { %369 = vmatpush.msra.mxu1 %v342_v40 }
  0x54   : > { %370 = vmatpush.msra.mxu1 %v341_v41 }
  0x56   : > { %371 = vmatpush.msra.mxu1 %v340_v43 }
  0x58   : > { %277 = vmatmul.f32.gmra.mxu0 %v225_v17  ;;  %372 = vmatpush.msra.mxu1 %v339_v44  ;;  %v451_v17 = vld [vmem:[#allocation5 + $0x168] sm:$0xff] }
  0x59   : > { %458 = vmatpush.msra.mxu2 %v451_v17  ;;  %v551_v17 = vld [vmem:[#allocation5 + $0x1f0] sm:$0xff] }
  0x60   : > { %280 = vmatmul.f32.gmra.mxu0 %v226_v18  ;;  %v450_v18 = vld [vmem:[#allocation5 + $0x160] sm:$0xff] }
  0x61   : > { %459 = vmatpush.msra.mxu2 %v450_v18 }
  0x68   : > { %283 = vmatmul.f32.gmra.mxu0 %v227_v19  ;;  %v449_v19 = vld [vmem:[#allocation5 + $0x158] sm:$0xff] }
  0x69   : > { %460 = vmatpush.msra.mxu2 %v449_v19 }
  0x70   : > { %286 = vmatmul.f32.gmra.mxu0 %v228_v20 }
  0x78   : > { %289 = vmatmul.f32.gmra.mxu0 %v229_v21 }
  0x80   : > { %292 = vmatmul.f32.gmra.mxu0 %v230_v22  ;;  %v448_v22 = vld [vmem:[#allocation5 + $0x150] sm:$0xff] }
  0x81   : > { %461 = vmatpush.msra.mxu2 %v448_v22  ;;  %v549_v22 = vld [vmem:[#allocation5 + $0x1e0] sm:$0xff] }
  0x88   : > { %295 = vmatmul.f32.gmra.mxu0 %v231_v23 }
  0x90   : > { %298 = vmatmul.f32.gmra.mxu0 %v232_v24  ;;  %v447_v24 = vld [vmem:[#allocation5 + $0x148] sm:$0xff] }
  0x91   : > { %462 = vmatpush.msra.mxu2 %v447_v24  ;;  %v547_v24 = vld [vmem:[#allocation5 + $0x1d0] sm:$0xff] }
  0x93   : > { %463 = vmatpush.msra.mxu2 %v446_v25 }
  0x95   : > { %464 = vmatpush.msra.mxu2 %v445_v26 }
  0x97   : > { %465 = vmatpush.msra.mxu2 %v444_v29  ;;  %v545_v29 = vld [vmem:[#allocation5 + $0x1c0] sm:$0xff] }
  0x98   : > { %301 = vmatmul.f32.gmra.mxu0 %v233_v28 }
  0x99   : > { %466 = vmatpush.msra.mxu2 %v443_v31  ;;  %v543_v31 = vld [vmem:[#allocation5 + $0x1b0] sm:$0xff] }
  0x9b   : > { %467 = vmatpush.msra.mxu2 %v442_v32  ;;  %v542_v32 = vld [vmem:[#allocation5 + $0x1a8] sm:$0xff] }
  0xa0   : > { %304 = vmatmul.f32.gmra.mxu0 %v234_v33  ;;  %v441_v33 = vld [vmem:[#allocation5 + $0x118] sm:$0xff] }
  0xa1   : > { %468 = vmatpush.msra.mxu2 %v441_v33 }
  0xa3   : > { %469 = vmatpush.msra.mxu2 %v440_v36 }
  0xa8   : > { %307 = vmatmul.f32.gmra.mxu0 %v235_v38  ;;  %v439_v38 = vld [vmem:[#allocation5 + $0x108] sm:$0xff] }
  0xa9   : > { %470 = vmatpush.msra.mxu2 %v439_v38  ;;  %v539_v38 = vld [vmem:[#allocation5 + $0x190] sm:$0xff] }
  0xab   : > { %471 = vmatpush.msra.mxu2 %v438_v39 }
  0xb0   : > { %310 = vmatmul.f32.gmra.mxu0 %v236_v42 }
  0xb8   : > { %313 = vmatmul.f32.gmra.mxu0 %v237_v45 }
  0xc0   : > { %316 = vmatmul.f32.gmra.mxu0 %v238_v46 }
  0xc8   : > { %319 = vmatmul.f32.gmra.mxu0 %v239_v47 }
  0xcd   : > { %v275_v49 = vpop.f32.mrf.mxu0 }
  0xce   : > { %v276_v50 = vadd.f32 %v1545_v48, %v275_v49 }
  0xd0   : > { %v323_v51 = vmax.f32 %v276_v50, 0.0  ;;  %v1563_v50 = vld [vmem:[#allocation7 + $0x1] ss:$0 sm:$0xff] }
  0xd2   : > { %373 = vmatmul.f32.vlgmr.msra.gmra.mxu1 %v323_v51 }
  0xd5   : > { %v278_v52 = vpop.f32.mrf.mxu0 }
  0xd6   : > { %v279_v53 = vadd.f32 %v1545_v48, %v278_v52 }
  0xd8   : > { %v324_v54 = vmax.f32 %v279_v53, 0.0 }
  0xda   : > { %376 = vmatmul.f32.gmra.mxu1 %v324_v54 }
  0xdd   : > { %v281_v55 = vpop.f32.mrf.mxu0 }
  0xde   : > { %v282_v56 = vadd.f32 %v1545_v48, %v281_v55 }
  0xe0   : > { %v325_v57 = vmax.f32 %v282_v56, 0.0 }
  0xe2   : > { %379 = vmatmul.f32.gmra.mxu1 %v325_v57 }
  0xe5   : > { %v284_v58 = vpop.f32.mrf.mxu0 }
  0xe6   : > { %v285_v59 = vadd.f32 %v1545_v48, %v284_v58 }
  0xe8   : > { %v326_v60 = vmax.f32 %v285_v59, 0.0 }
  0xea   : > { %382 = vmatmul.f32.gmra.mxu1 %v326_v60 }
  0xed   : > { %v287_v61 = vpop.f32.mrf.mxu0 }
  0xee   : > { %v288_v62 = vadd.f32 %v1545_v48, %v287_v61 }
  0xf0   : > { %v327_v63 = vmax.f32 %v288_v62, 0.0 }
  0xf2   : > { %385 = vmatmul.f32.gmra.mxu1 %v327_v63 }
  0xf5   : > { %v290_v0 = vpop.f32.mrf.mxu0 }
  0xf6   : > { %v291_v1 = vadd.f32 %v1545_v48, %v290_v0 }
  0xf8   : > { %v328_v2 = vmax.f32 %v291_v1, 0.0 }
  0xfa   : > { %388 = vmatmul.f32.gmra.mxu1 %v328_v2 }
  0xfd   : > { %v293_v3 = vpop.f32.mrf.mxu0 }
  0xfe   : > { %v294_v4 = vadd.f32 %v1545_v48, %v293_v3 }
 0x100   : > { %v329_v5 = vmax.f32 %v294_v4, 0.0 }
 0x102   : > { %391 = vmatmul.f32.gmra.mxu1 %v329_v5 }
 0x105   : > { %v296_v6 = vpop.f32.mrf.mxu0 }
 0x106   : > { %v297_v7 = vadd.f32 %v1545_v48, %v296_v6 }
 0x108   : > { %v330_v8 = vmax.f32 %v297_v7, 0.0 }
 0x10a   : > { %394 = vmatmul.f32.gmra.mxu1 %v330_v8 }
 0x10d   : > { %v299_v9 = vpop.f32.mrf.mxu0 }
 0x10e   : > { %v300_v10 = vadd.f32 %v1545_v48, %v299_v9 }
 0x110   : > { %v331_v11 = vmax.f32 %v300_v10, 0.0 }
 0x112   : > { %397 = vmatmul.f32.gmra.mxu1 %v331_v11 }
 0x115   : > { %v302_v13 = vpop.f32.mrf.mxu0 }
 0x116   : > { %v303_v14 = vadd.f32 %v1545_v48, %v302_v13 }
 0x118   : > { %v332_v16 = vmax.f32 %v303_v14, 0.0 }
 0x11a   : > { %400 = vmatmul.f32.gmra.mxu1 %v332_v16  ;;  %v552_v16 = vld [vmem:[#allocation5 + $0x1f8] sm:$0xff] }
 0x11b   : > { %555 = vmatpush.msra.mxu3 %v552_v16 }
 0x11d   : > { %v305_v20 = vpop.f32.mrf.mxu0  ;;  %556 = vmatpush.msra.mxu3 %v551_v17  ;;  %v626_v17 = vld [vmem:[#allocation5 + $0x230] sm:$0xff] }
 0x11e   : > { %v306_v21 = vadd.f32 %v1545_v48, %v305_v20  ;;  %v550_v20 = vld [vmem:[#allocation5 + $0x1e8] sm:$0xff] }
 0x11f   : > { %557 = vmatpush.msra.mxu3 %v550_v20 }
 0x120   : > { %v333_v23 = vmax.f32 %v306_v21, 0.0 }
 0x121   : > { %558 = vmatpush.msra.mxu3 %v549_v22 }
 0x122   : > { %403 = vmatmul.f32.gmra.mxu1 %v333_v23  ;;  %v548_v23 = vld [vmem:[#allocation5 + $0x1d8] sm:$0xff] }
 0x123   : > { %559 = vmatpush.msra.mxu3 %v548_v23 }
 0x125   : > { %v308_v27 = vpop.f32.mrf.mxu0  ;;  %560 = vmatpush.msra.mxu3 %v547_v24 }
 0x126   : > { %v309_v28 = vadd.f32 %v1545_v48, %v308_v27  ;;  %v546_v27 = vld [vmem:[#allocation5 + $0x1c8] sm:$0xff] }
 0x127   : > { %561 = vmatpush.msra.mxu3 %v546_v27 }
 0x128   : > { %v334_v30 = vmax.f32 %v309_v28, 0.0 }
 0x129   : > { %562 = vmatpush.msra.mxu3 %v545_v29  ;;  %v623_v29 = vld [vmem:[#allocation5 + $0x218] sm:$0xff] }
 0x12a   : > { %406 = vmatmul.f32.gmra.mxu1 %v334_v30  ;;  %v544_v30 = vld [vmem:[#allocation5 + $0x1b8] sm:$0xff] }
 0x12b   : > { %563 = vmatpush.msra.mxu3 %v544_v30 }
 0x12d   : > { %v311_v34 = vpop.f32.mrf.mxu0  ;;  %564 = vmatpush.msra.mxu3 %v543_v31 }
 0x12e   : > { %v312_v35 = vadd.f32 %v1545_v48, %v311_v34 }
 0x12f   : > { %565 = vmatpush.msra.mxu3 %v542_v32 }
 0x130   : > { %v335_v37 = vmax.f32 %v312_v35, 0.0  ;;  %v541_v35 = vld [vmem:[#allocation5 + $0x1a0] sm:$0xff] }
 0x131   : > { %566 = vmatpush.msra.mxu3 %v541_v35 }
 0x132   : > { %409 = vmatmul.f32.gmra.mxu1 %v335_v37  ;;  %v540_v37 = vld [vmem:[#allocation5 + $0x198] sm:$0xff] }
 0x133   : > { %567 = vmatpush.msra.mxu3 %v540_v37  ;;  %v621_v37 = vld [vmem:[#allocation5 + $0x208] sm:$0xff] }
 0x135   : > { %v314_v40 = vpop.f32.mrf.mxu0  ;;  %568 = vmatpush.msra.mxu3 %v539_v38  ;;  %v620_v38 = vld [vmem:[#allocation5 + $0x200] sm:$0xff] }
 0x136   : > { %v315_v41 = vadd.f32 %v1545_v48, %v314_v40 }
 0x138   : > { %v336_v42 = vmax.f32 %v315_v41, 0.0  ;;  %v538_v41 = vld [vmem:[#allocation5 + $0x188] sm:$0xff] }
 0x139   : > { %569 = vmatpush.msra.mxu3 %v538_v41 }
 0x13a   : > { %412 = vmatmul.f32.gmra.mxu1 %v336_v42  ;;  %v537_v42 = vld [vmem:[#allocation5 + $0x180] sm:$0xff] }
 0x13b   : > { %570 = vmatpush.msra.mxu3 %v537_v42 }
 0x13d   : > { %v317_v43 = vpop.f32.mrf.mxu0 }
 0x13e   : > { %v318_v44 = vadd.f32 %v1545_v48, %v317_v43 }
 0x140   : > { %v337_v45 = vmax.f32 %v318_v44, 0.0 }
 0x142   : > { %415 = vmatmul.f32.gmra.mxu1 %v337_v45 }
 0x145   : > { %v320_v46 = vpop.f32.mrf.mxu0 }
 0x146   : > { %v321_v47 = vadd.f32 %v1545_v48, %v320_v46  ;;  %v635_v46 = vld [vmem:[#allocation5 + $0x278] sm:$0xff] }
 0x147   : > { %638 = vmatpush.msrb.mxu0 %v635_v46 }
 0x148   : > { %v338_v49 = vmax.f32 %v321_v47, 0.0 }
 0x14a   : > { %418 = vmatmul.f32.gmra.mxu1 %v338_v49 }
 0x14f   : > { %v374_v51 = vpop.f32.mrf.mxu1 }
 0x150   : > { %v375_v52 = vadd.f32 %v1563_v50, %v374_v51 }
 0x152   : > { %v422_v53 = vmax.f32 %v375_v52, 0.0  ;;  %v634_v52 = vld [vmem:[#allocation5 + $0x270] sm:$0xff] }
 0x153   : > { %639 = vmatpush.msrb.mxu0 %v634_v52 }
 0x154   : > { %472 = vmatmul.f32.vlgmr.msra.gmra.mxu2 %v422_v53 }
 0x157   : > { %v377_v54 = vpop.f32.mrf.mxu1 }
 0x158   : > { %v378_v55 = vadd.f32 %v1563_v50, %v377_v54  ;;  %v633_v54 = vld [vmem:[#allocation5 + $0x268] sm:$0xff] }
 0x159   : > { %640 = vmatpush.msrb.mxu0 %v633_v54 }
 0x15a   : > { %v423_v56 = vmax.f32 %v378_v55, 0.0  ;;  %v1581_v55 = vld [vmem:[#allocation7 + $0x2] ss:$0 sm:$0xff] }
 0x15c   : > { %475 = vmatmul.f32.gmra.mxu2 %v423_v56 }
 0x15f   : > { %v380_v57 = vpop.f32.mrf.mxu1 }
 0x160   : > { %v381_v58 = vadd.f32 %v1563_v50, %v380_v57 }
 0x162   : > { %v424_v59 = vmax.f32 %v381_v58, 0.0  ;;  %v632_v58 = vld [vmem:[#allocation5 + $0x260] sm:$0xff] }
 0x163   : > { %641 = vmatpush.msrb.mxu0 %v632_v58  ;;  %v1599_v58 = vld [vmem:[#allocation7 + $0x3] ss:$0 sm:$0xff] }
 0x164   : > { %478 = vmatmul.f32.gmra.mxu2 %v424_v59 }
 0x167   : > { %v383_v48 = vpop.f32.mrf.mxu1 }
 0x168   : > { %v384_v60 = vadd.f32 %v1563_v50, %v383_v48 }
 0x16a   : > { %v425_v61 = vmax.f32 %v384_v60, 0.0 }
 0x16c   : > { %481 = vmatmul.f32.gmra.mxu2 %v425_v61  ;;  %v631_v61 = vld [vmem:[#allocation5 + $0x258] sm:$0xff] }
 0x16d   : > { %642 = vmatpush.msrb.mxu0 %v631_v61 }
 0x16f   : > { %v386_v62 = vpop.f32.mrf.mxu1 }
 0x170   : > { %v387_v63 = vadd.f32 %v1563_v50, %v386_v62 }
 0x172   : > { %v426_v0 = vmax.f32 %v387_v63, 0.0 }
 0x174   : > { %484 = vmatmul.f32.gmra.mxu2 %v426_v0  ;;  %v630_v0 = vld [vmem:[#allocation5 + $0x250] sm:$0xff] }
 0x175   : > { %643 = vmatpush.msrb.mxu0 %v630_v0  ;;  %v728_v0 = vld [vmem:[#allocation5 + $0x2c8] sm:$0xff] }
 0x177   : > { %v389_v1 = vpop.f32.mrf.mxu1 }
 0x178   : > { %v390_v2 = vadd.f32 %v1563_v50, %v389_v1 }
 0x17a   : > { %v427_v3 = vmax.f32 %v390_v2, 0.0 }
 0x17c   : > { %487 = vmatmul.f32.gmra.mxu2 %v427_v3 }
 0x17f   : > { %v392_v4 = vpop.f32.mrf.mxu1 }
 0x180   : > { %v393_v5 = vadd.f32 %v1563_v50, %v392_v4  ;;  %v629_v4 = vld [vmem:[#allocation5 + $0x248] sm:$0xff] }
 0x181   : > { %644 = vmatpush.msrb.mxu0 %v629_v4 }
 0x182   : > { %v428_v6 = vmax.f32 %v393_v5, 0.0 }
 0x184   : > { %490 = vmatmul.f32.gmra.mxu2 %v428_v6 }
 0x187   : > { %v395_v7 = vpop.f32.mrf.mxu1 }
 0x188   : > { %v396_v8 = vadd.f32 %v1563_v50, %v395_v7 }
 0x18a   : > { %v429_v9 = vmax.f32 %v396_v8, 0.0 }
 0x18c   : > { %493 = vmatmul.f32.gmra.mxu2 %v429_v9  ;;  %v628_v9 = vld [vmem:[#allocation5 + $0x240] sm:$0xff] }
 0x18d   : > { %645 = vmatpush.msrb.mxu0 %v628_v9  ;;  %v725_v9 = vld [vmem:[#allocation5 + $0x2b0] sm:$0xff] }
 0x18f   : > { %v398_v10 = vpop.f32.mrf.mxu1 }
 0x190   : > { %v399_v11 = vadd.f32 %v1563_v50, %v398_v10 }
 0x192   : > { %v430_v12 = vmax.f32 %v399_v11, 0.0 }
 0x194   : > { %496 = vmatmul.f32.gmra.mxu2 %v430_v12 }
 0x197   : > { %v401_v13 = vpop.f32.mrf.mxu1 }
 0x198   : > { %v402_v14 = vadd.f32 %v1563_v50, %v401_v13  ;;  %v627_v13 = vld [vmem:[#allocation5 + $0x238] sm:$0xff] }
 0x199   : > { %646 = vmatpush.msrb.mxu0 %v627_v13 }
 0x19a   : > { %v431_v15 = vmax.f32 %v402_v14, 0.0 }
 0x19b   : > { %647 = vmatpush.msrb.mxu0 %v626_v17 }
 0x19c   : > { %499 = vmatmul.f32.gmra.mxu2 %v431_v15 }
 0x19f   : > { %v404_v18 = vpop.f32.mrf.mxu1 }
 0x1a0   : > { %v405_v19 = vadd.f32 %v1563_v50, %v404_v18 }
 0x1a2   : > { %v432_v21 = vmax.f32 %v405_v19, 0.0 }
 0x1a4   : > { %502 = vmatmul.f32.gmra.mxu2 %v432_v21  ;;  %v625_v21 = vld [vmem:[#allocation5 + $0x228] sm:$0xff] }
 0x1a5   : > { %648 = vmatpush.msrb.mxu0 %v625_v21  ;;  %v721_v21 = vld [vmem:[#allocation5 + $0x290] sm:$0xff] }
 0x1a7   : > { %v407_v25 = vpop.f32.mrf.mxu1 }
 0x1a8   : > { %v408_v26 = vadd.f32 %v1563_v50, %v407_v25  ;;  %v624_v25 = vld [vmem:[#allocation5 + $0x220] sm:$0xff] }
 0x1a9   : > { %649 = vmatpush.msrb.mxu0 %v624_v25 }
 0x1aa   : > { %v433_v28 = vmax.f32 %v408_v26, 0.0 }
 0x1ab   : > { %650 = vmatpush.msrb.mxu0 %v623_v29 }
 0x1ac   : > { %505 = vmatmul.f32.gmra.mxu2 %v433_v28 }
 0x1af   : > { %v410_v33 = vpop.f32.mrf.mxu1 }
 0x1b0   : > { %v411_v34 = vadd.f32 %v1563_v50, %v410_v33  ;;  %v622_v33 = vld [vmem:[#allocation5 + $0x210] sm:$0xff] }
 0x1b1   : > { %651 = vmatpush.msrb.mxu0 %v622_v33  ;;  %v832_v33 = vld [vmem:[#allocation5 + $0x370] sm:$0xff] }
 0x1b2   : > { %v434_v36 = vmax.f32 %v411_v34, 0.0 }
 0x1b3   : > { %652 = vmatpush.msrb.mxu0 %v621_v37 }
 0x1b4   : > { %508 = vmatmul.f32.gmra.mxu2 %v434_v36 }
 0x1b5   : > { %653 = vmatpush.msrb.mxu0 %v620_v38 }
 0x1b7   : > { %v413_v39 = vpop.f32.mrf.mxu1 }
 0x1b8   : > { %v414_v40 = vadd.f32 %v1563_v50, %v413_v39 }
 0x1ba   : > { %v435_v43 = vmax.f32 %v414_v40, 0.0 }
 0x1bc   : > { %511 = vmatmul.f32.gmra.mxu2 %v435_v43 }
 0x1bf   : > { %v416_v44 = vpop.f32.mrf.mxu1 }
 0x1c0   : > { %v417_v45 = vadd.f32 %v1563_v50, %v416_v44 }
 0x1c2   : > { %v436_v47 = vmax.f32 %v417_v45, 0.0  ;;  %v734_v45 = vld [vmem:[#allocation5 + $0x2f8] sm:$0xff] }
 0x1c3   : > { %737 = vmatpush.msrb.mxu1 %v734_v45 }
 0x1c4   : > { %514 = vmatmul.f32.gmra.mxu2 %v436_v47 }
 0x1c7   : > { %v419_v49 = vpop.f32.mrf.mxu1 }
 0x1c8   : > { %v420_v51 = vadd.f32 %v1563_v50, %v419_v49 }
 0x1ca   : > { %v437_v53 = vmax.f32 %v420_v51, 0.0  ;;  %v733_v51 = vld [vmem:[#allocation5 + $0x2f0] sm:$0xff] }
 0x1cb   : > { %738 = vmatpush.msrb.mxu1 %v733_v51 }
 0x1cc   : > { %517 = vmatmul.f32.gmra.mxu2 %v437_v53 }
 0x1d7   : > { %v473_v56 = vpop.f32.mrf.mxu2 }
 0x1d8   : > { %v474_v57 = vadd.f32 %v1581_v55, %v473_v56  ;;  %v732_v56 = vld [vmem:[#allocation5 + $0x2e8] sm:$0xff] }
 0x1d9   : > { %739 = vmatpush.msrb.mxu1 %v732_v56 }
 0x1da   : > { %v521_v59 = vmax.f32 %v474_v57, 0.0  ;;  %v731_v57 = vld [vmem:[#allocation5 + $0x2e0] sm:$0xff] }
 0x1db   : > { %740 = vmatpush.msrb.mxu1 %v731_v57 }
 0x1dc   : > { %571 = vmatmul.f32.vlgmr.msra.gmra.mxu3 %v521_v59 }
 0x1df   : > { %v476_v48 = vpop.f32.mrf.mxu2 }
 0x1e0   : > { %v477_v60 = vadd.f32 %v1581_v55, %v476_v48 }
 0x1e2   : > { %v522_v50 = vmax.f32 %v477_v60, 0.0  ;;  %v730_v60 = vld [vmem:[#allocation5 + $0x2d8] sm:$0xff] }
 0x1e3   : > { %741 = vmatpush.msrb.mxu1 %v730_v60 }
 0x1e4   : > { %574 = vmatmul.f32.gmra.mxu3 %v522_v50 }
 0x1e7   : > { %v479_v62 = vpop.f32.mrf.mxu2 }
 0x1e8   : > { %v480_v63 = vadd.f32 %v1581_v55, %v479_v62  ;;  %v729_v62 = vld [vmem:[#allocation5 + $0x2d0] sm:$0xff] }
 0x1e9   : > { %742 = vmatpush.msrb.mxu1 %v729_v62 }
 0x1ea   : > { %v523_v1 = vmax.f32 %v480_v63, 0.0 }
 0x1eb   : > { %743 = vmatpush.msrb.mxu1 %v728_v0  ;;  %v824_v0 = vld [vmem:[#allocation5 + $0x330] sm:$0xff] }
 0x1ec   : > { %577 = vmatmul.f32.gmra.mxu3 %v523_v1 }
 0x1ef   : > { %v482_v2 = vpop.f32.mrf.mxu2 }
 0x1f0   : > { %v483_v3 = vadd.f32 %v1581_v55, %v482_v2 }
 0x1f2   : > { %v524_v5 = vmax.f32 %v483_v3, 0.0  ;;  %v727_v3 = vld [vmem:[#allocation5 + $0x2c0] sm:$0xff] }
 0x1f3   : > { %744 = vmatpush.msrb.mxu1 %v727_v3 }
 0x1f4   : > { %580 = vmatmul.f32.gmra.mxu3 %v524_v5 }
 0x1f7   : > { %v485_v6 = vpop.f32.mrf.mxu2 }
 0x1f8   : > { %v486_v7 = vadd.f32 %v1581_v55, %v485_v6  ;;  %v726_v6 = vld [vmem:[#allocation5 + $0x2b8] sm:$0xff] }
 0x1f9   : > { %745 = vmatpush.msrb.mxu1 %v726_v6 }
 0x1fa   : > { %v525_v8 = vmax.f32 %v486_v7, 0.0 }
 0x1fb   : > { %746 = vmatpush.msrb.mxu1 %v725_v9 }
 0x1fc   : > { %583 = vmatmul.f32.gmra.mxu3 %v525_v8 }
 0x1ff   : > { %v488_v10 = vpop.f32.mrf.mxu2 }
 0x200   : > { %v489_v11 = vadd.f32 %v1581_v55, %v488_v10 }
 0x202   : > { %v526_v12 = vmax.f32 %v489_v11, 0.0 }
 0x204   : > { %586 = vmatmul.f32.gmra.mxu3 %v526_v12  ;;  %v724_v12 = vld [vmem:[#allocation5 + $0x2a8] sm:$0xff] }
 0x205   : > { %747 = vmatpush.msrb.mxu1 %v724_v12  ;;  %v821_v12 = vld [vmem:[#allocation5 + $0x318] sm:$0xff] }
 0x207   : > { %v491_v14 = vpop.f32.mrf.mxu2 }
 0x208   : > { %v492_v15 = vadd.f32 %v1581_v55, %v491_v14 }
 0x20a   : > { %v527_v16 = vmax.f32 %v492_v15, 0.0  ;;  %v723_v15 = vld [vmem:[#allocation5 + $0x2a0] sm:$0xff] }
 0x20b   : > { %748 = vmatpush.msrb.mxu1 %v723_v15 }
 0x20c   : > { %589 = vmatmul.f32.gmra.mxu3 %v527_v16 }
 0x20f   : > { %v494_v18 = vpop.f32.mrf.mxu2 }
 0x210   : > { %v495_v19 = vadd.f32 %v1581_v55, %v494_v18  ;;  %v722_v18 = vld [vmem:[#allocation5 + $0x298] sm:$0xff] }
 0x211   : > { %749 = vmatpush.msrb.mxu1 %v722_v18 }
 0x212   : > { %v528_v20 = vmax.f32 %v495_v19, 0.0 }
 0x213   : > { %750 = vmatpush.msrb.mxu1 %v721_v21 }
 0x214   : > { %592 = vmatmul.f32.gmra.mxu3 %v528_v20 }
 0x217   : > { %v497_v22 = vpop.f32.mrf.mxu2 }
 0x218   : > { %v498_v23 = vadd.f32 %v1581_v55, %v497_v22 }
 0x21a   : > { %v529_v24 = vmax.f32 %v498_v23, 0.0 }
 0x21c   : > { %595 = vmatmul.f32.gmra.mxu3 %v529_v24  ;;  %v720_v24 = vld [vmem:[#allocation5 + $0x288] sm:$0xff] }
 0x21d   : > { %751 = vmatpush.msrb.mxu1 %v720_v24  ;;  %v818_v24 = vld [vmem:[#allocation5 + $0x300] sm:$0xff] }
 0x21f   : > { %v500_v26 = vpop.f32.mrf.mxu2 }
 0x220   : > { %v501_v27 = vadd.f32 %v1581_v55, %v500_v26 }
 0x222   : > { %v530_v28 = vmax.f32 %v501_v27, 0.0  ;;  %v719_v27 = vld [vmem:[#allocation5 + $0x280] sm:$0xff] }
 0x223   : > { %752 = vmatpush.msrb.mxu1 %v719_v27 }
 0x224   : > { %598 = vmatmul.f32.gmra.mxu3 %v530_v28 }
 0x227   : > { %v503_v30 = vpop.f32.mrf.mxu2 }
 0x228   : > { %v504_v31 = vadd.f32 %v1581_v55, %v503_v30  ;;  %v833_v30 = vld [vmem:[#allocation5 + $0x378] sm:$0xff] }
 0x229   : > { %836 = vmatpush.msrb.mxu2 %v833_v30 }
 0x22a   : > { %v531_v32 = vmax.f32 %v504_v31, 0.0 }
 0x22b   : > { %837 = vmatpush.msrb.mxu2 %v832_v33 }
 0x22c   : > { %601 = vmatmul.f32.gmra.mxu3 %v531_v32 }
 0x22f   : > { %v506_v34 = vpop.f32.mrf.mxu2 }
 0x230   : > { %v507_v35 = vadd.f32 %v1581_v55, %v506_v34 }
 0x232   : > { %v532_v36 = vmax.f32 %v507_v35, 0.0 }
 0x234   : > { %604 = vmatmul.f32.gmra.mxu3 %v532_v36  ;;  %v831_v36 = vld [vmem:[#allocation5 + $0x368] sm:$0xff] }
 0x235   : > { %838 = vmatpush.msrb.mxu2 %v831_v36 }
 0x237   : > { %v509_v39 = vpop.f32.mrf.mxu2 }
 0x238   : > { %v510_v40 = vadd.f32 %v1581_v55, %v509_v39  ;;  %v1617_v39 = vld [vmem:[#allocation7 + $0x4] ss:$0 sm:$0xff] }
 0x23a   : > { %v533_v41 = vmax.f32 %v510_v40, 0.0  ;;  %v830_v40 = vld [vmem:[#allocation5 + $0x360] sm:$0xff] }
 0x23b   : > { %839 = vmatpush.msrb.mxu2 %v830_v40  ;;  %v1635_v40 = vld [vmem:[#allocation7 + $0x5] ss:$0 sm:$0xff] }
 0x23c   : > { %607 = vmatmul.f32.gmra.mxu3 %v533_v41 }
 0x23f   : > { %v512_v42 = vpop.f32.mrf.mxu2 }
 0x240   : > { %v513_v43 = vadd.f32 %v1581_v55, %v512_v42 }
 0x242   : > { %v534_v44 = vmax.f32 %v513_v43, 0.0 }
 0x244   : > { %610 = vmatmul.f32.gmra.mxu3 %v534_v44  ;;  %v829_v44 = vld [vmem:[#allocation5 + $0x358] sm:$0xff] }
 0x245   : > { %840 = vmatpush.msrb.mxu2 %v829_v44 }
 0x247   : > { %v515_v46 = vpop.f32.mrf.mxu2 }
 0x248   : > { %v516_v47 = vadd.f32 %v1581_v55, %v515_v46 }
 0x24a   : > { %v535_v49 = vmax.f32 %v516_v47, 0.0 }
 0x24c   : > { %613 = vmatmul.f32.gmra.mxu3 %v535_v49  ;;  %v828_v49 = vld [vmem:[#allocation5 + $0x350] sm:$0xff] }
 0x24d   : > { %841 = vmatpush.msrb.mxu2 %v828_v49 }
 0x24f   : > { %v518_v52 = vpop.f32.mrf.mxu2 }
 0x250   : > { %v519_v53 = vadd.f32 %v1581_v55, %v518_v52 }
 0x252   : > { %v536_v54 = vmax.f32 %v519_v53, 0.0 }
 0x254   : > { %616 = vmatmul.f32.gmra.mxu3 %v536_v54  ;;  %v827_v54 = vld [vmem:[#allocation5 + $0x348] sm:$0xff] }
 0x255   : > { %842 = vmatpush.msrb.mxu2 %v827_v54  ;;  %v927_v54 = vld [vmem:[#allocation5 + $0x3d0] sm:$0xff] }
 0x25f   : > { %v572_v59 = vpop.f32.mrf.mxu3 }
 0x260   : > { %v573_v48 = vadd.f32 %v1599_v58, %v572_v59  ;;  %v826_v59 = vld [vmem:[#allocation5 + $0x340] sm:$0xff] }
 0x261   : > { %843 = vmatpush.msrb.mxu2 %v826_v59  ;;  %v926_v59 = vld [vmem:[#allocation5 + $0x3c8] sm:$0xff] }
 0x262   : > { %654 = vmatmul.f32.vlgmr.msrb.gmra.mxu0 %v573_v48 }
 0x267   : > { %v575_v61 = vpop.f32.mrf.mxu3 }
 0x268   : > { %v576_v50 = vadd.f32 %v1599_v58, %v575_v61 }
 0x26a   : > { %657 = vmatmul.f32.gmra.mxu0 %v576_v50  ;;  %v825_v50 = vld [vmem:[#allocation5 + $0x338] sm:$0xff] }
 0x26b   : > { %844 = vmatpush.msrb.mxu2 %v825_v50  ;;  %v925_v50 = vld [vmem:[#allocation5 + $0x3c0] sm:$0xff] }
 0x26d   : > { %845 = vmatpush.msrb.mxu2 %v824_v0  ;;  %v924_v0 = vld [vmem:[#allocation5 + $0x3b8] sm:$0xff] }
 0x26f   : > { %v578_v55 = vpop.f32.mrf.mxu3 }
 0x270   : > { %v579_v63 = vadd.f32 %v1599_v58, %v578_v55 }
 0x272   : > { %660 = vmatmul.f32.gmra.mxu0 %v579_v63 }
 0x277   : > { %v581_v1 = vpop.f32.mrf.mxu3 }
 0x278   : > { %v582_v2 = vadd.f32 %v1599_v58, %v581_v1 }
 0x27a   : > { %663 = vmatmul.f32.gmra.mxu0 %v582_v2 }
 0x27f   : > { %v584_v4 = vpop.f32.mrf.mxu3 }
 0x280   : > { %v585_v5 = vadd.f32 %v1599_v58, %v584_v4  ;;  %v823_v4 = vld [vmem:[#allocation5 + $0x328] sm:$0xff] }
 0x281   : > { %846 = vmatpush.msrb.mxu2 %v823_v4  ;;  %v923_v4 = vld [vmem:[#allocation5 + $0x3b0] sm:$0xff] }
 0x282   : > { %666 = vmatmul.f32.gmra.mxu0 %v585_v5 }
 0x287   : > { %v587_v7 = vpop.f32.mrf.mxu3 }
 0x288   : > { %v588_v8 = vadd.f32 %v1599_v58, %v587_v7 }
 0x28a   : > { %669 = vmatmul.f32.gmra.mxu0 %v588_v8  ;;  %v822_v8 = vld [vmem:[#allocation5 + $0x320] sm:$0xff] }
 0x28b   : > { %847 = vmatpush.msrb.mxu2 %v822_v8  ;;  %v922_v8 = vld [vmem:[#allocation5 + $0x3a8] sm:$0xff] }
 0x28d   : > { %848 = vmatpush.msrb.mxu2 %v821_v12  ;;  %v921_v12 = vld [vmem:[#allocation5 + $0x3a0] sm:$0xff] }
 0x28f   : > { %v590_v10 = vpop.f32.mrf.mxu3 }
 0x290   : > { %v591_v11 = vadd.f32 %v1599_v58, %v590_v10 }
 0x292   : > { %672 = vmatmul.f32.gmra.mxu0 %v591_v11 }
 0x297   : > { %v593_v13 = vpop.f32.mrf.mxu3 }
 0x298   : > { %v594_v14 = vadd.f32 %v1599_v58, %v593_v13 }
 0x29a   : > { %675 = vmatmul.f32.gmra.mxu0 %v594_v14 }
 0x29f   : > { %v596_v16 = vpop.f32.mrf.mxu3 }
 0x2a0   : > { %v597_v17 = vadd.f32 %v1599_v58, %v596_v16  ;;  %v820_v16 = vld [vmem:[#allocation5 + $0x310] sm:$0xff] }
 0x2a1   : > { %849 = vmatpush.msrb.mxu2 %v820_v16  ;;  %v920_v16 = vld [vmem:[#allocation5 + $0x398] sm:$0xff] }
 0x2a2   : > { %678 = vmatmul.f32.gmra.mxu0 %v597_v17 }
 0x2a7   : > { %v599_v19 = vpop.f32.mrf.mxu3 }
 0x2a8   : > { %v600_v20 = vadd.f32 %v1599_v58, %v599_v19 }
 0x2aa   : > { %681 = vmatmul.f32.gmra.mxu0 %v600_v20  ;;  %v819_v20 = vld [vmem:[#allocation5 + $0x308] sm:$0xff] }
 0x2ab   : > { %850 = vmatpush.msrb.mxu2 %v819_v20  ;;  %v919_v20 = vld [vmem:[#allocation5 + $0x390] sm:$0xff] }
 0x2ad   : > { %851 = vmatpush.msrb.mxu2 %v818_v24  ;;  %v918_v24 = vld [vmem:[#allocation5 + $0x388] sm:$0xff] }
 0x2af   : > { %v602_v22 = vpop.f32.mrf.mxu3 }
 0x2b0   : > { %v603_v23 = vadd.f32 %v1599_v58, %v602_v22 }
 0x2b2   : > { %684 = vmatmul.f32.gmra.mxu0 %v603_v23 }
 0x2b7   : > { %v605_v25 = vpop.f32.mrf.mxu3 }
 0x2b8   : > { %v606_v26 = vadd.f32 %v1599_v58, %v605_v25 }
 0x2ba   : > { %687 = vmatmul.f32.gmra.mxu0 %v606_v26 }
 0x2bf   : > { %v608_v28 = vpop.f32.mrf.mxu3 }
 0x2c0   : > { %v609_v29 = vadd.f32 %v1599_v58, %v608_v28 }
 0x2c2   : > { %690 = vmatmul.f32.gmra.mxu0 %v609_v29 }
 0x2c7   : > { %v611_v31 = vpop.f32.mrf.mxu3 }
 0x2c8   : > { %v612_v32 = vadd.f32 %v1599_v58, %v611_v31  ;;  %v932_v31 = vld [vmem:[#allocation5 + $0x3f8] sm:$0xff] }
 0x2c9   : > { %935 = vmatpush.msrb.mxu3 %v932_v31 }
 0x2ca   : > { %693 = vmatmul.f32.gmra.mxu0 %v612_v32 }
 0x2cf   : > { %v614_v34 = vpop.f32.mrf.mxu3 }
 0x2d0   : > { %v615_v35 = vadd.f32 %v1599_v58, %v614_v34 }
 0x2d2   : > { %696 = vmatmul.f32.gmra.mxu0 %v615_v35  ;;  %v931_v35 = vld [vmem:[#allocation5 + $0x3f0] sm:$0xff] }
 0x2d3   : > { %936 = vmatpush.msrb.mxu3 %v931_v35 }
 0x2d7   : > { %v617_v37 = vpop.f32.mrf.mxu3 }
 0x2d8   : > { %v618_v38 = vadd.f32 %v1599_v58, %v617_v37 }
 0x2da   : > { %699 = vmatmul.f32.gmra.mxu0 %v618_v38 }
 0x2df   : > { %v655_v41 = vpop.f32.mrf.mxu0 }
 0x2e0   : > { %v656_v42 = vadd.f32 %v1617_v39, %v655_v41  ;;  %v930_v41 = vld [vmem:[#allocation5 + $0x3e8] sm:$0xff] }
 0x2e1   : > { %937 = vmatpush.msrb.mxu3 %v930_v41 }
 0x2e2   : > { %v703_v43 = vmax.f32 %v656_v42, 0.0 }
 0x2e4   : > { %753 = vmatmul.f32.vlgmr.msrb.gmra.mxu1 %v703_v43 }
 0x2e7   : > { %v658_v45 = vpop.f32.mrf.mxu0 }
 0x2e8   : > { %v659_v46 = vadd.f32 %v1617_v39, %v658_v45  ;;  %v929_v45 = vld [vmem:[#allocation5 + $0x3e0] sm:$0xff] }
 0x2e9   : > { %938 = vmatpush.msrb.mxu3 %v929_v45 }
 0x2ea   : > { %v704_v47 = vmax.f32 %v659_v46, 0.0 }
 0x2ec   : > { %756 = vmatmul.f32.gmra.mxu1 %v704_v47 }
 0x2ef   : > { %v661_v51 = vpop.f32.mrf.mxu0 }
 0x2f0   : > { %v662_v52 = vadd.f32 %v1617_v39, %v661_v51  ;;  %v928_v51 = vld [vmem:[#allocation5 + $0x3d8] sm:$0xff] }
 0x2f1   : > { %939 = vmatpush.msrb.mxu3 %v928_v51 }
 0x2f2   : > { %v705_v53 = vmax.f32 %v662_v52, 0.0 }
 0x2f3   : > { %940 = vmatpush.msrb.mxu3 %v927_v54 }
 0x2f4   : > { %759 = vmatmul.f32.gmra.mxu1 %v705_v53 }
 0x2f5   : > { %941 = vmatpush.msrb.mxu3 %v926_v59 }
 0x2f7   : > { %v664_v56 = vpop.f32.mrf.mxu0  ;;  %942 = vmatpush.msrb.mxu3 %v925_v50 }
 0x2f8   : > { %v665_v57 = vadd.f32 %v1617_v39, %v664_v56 }
 0x2f9   : > { %943 = vmatpush.msrb.mxu3 %v924_v0 }
 0x2fa   : > { %v706_v58 = vmax.f32 %v665_v57, 0.0 }
 0x2fb   : > { %944 = vmatpush.msrb.mxu3 %v923_v4 }
 0x2fc   : > { %762 = vmatmul.f32.gmra.mxu1 %v706_v58 }
 0x2fd   : > { %945 = vmatpush.msrb.mxu3 %v922_v8 }
 0x2ff   : > { %v667_v48 = vpop.f32.mrf.mxu0  ;;  %946 = vmatpush.msrb.mxu3 %v921_v12 }
 0x300   : > { %v668_v60 = vadd.f32 %v1617_v39, %v667_v48 }
 0x301   : > { %947 = vmatpush.msrb.mxu3 %v920_v16 }
 0x302   : > { %v707_v61 = vmax.f32 %v668_v60, 0.0 }
 0x303   : > { %948 = vmatpush.msrb.mxu3 %v919_v20 }
 0x304   : > { %765 = vmatmul.f32.gmra.mxu1 %v707_v61 }
 0x305   : > { %949 = vmatpush.msrb.mxu3 %v918_v24 }
 0x307   : > { %v670_v62 = vpop.f32.mrf.mxu0 }
 0x308   : > { %v671_v55 = vadd.f32 %v1617_v39, %v670_v62 }
 0x30a   : > { %v708_v63 = vmax.f32 %v671_v55, 0.0 }
 0x30c   : > { %768 = vmatmul.f32.gmra.mxu1 %v708_v63 }
 0x30f   : > { %v673_v1 = vpop.f32.mrf.mxu0 }
 0x310   : > { %v674_v2 = vadd.f32 %v1617_v39, %v673_v1 }
 0x312   : > { %v709_v3 = vmax.f32 %v674_v2, 0.0 }
 0x314   : > { %771 = vmatmul.f32.gmra.mxu1 %v709_v3 }
 0x317   : > { %v676_v5 = vpop.f32.mrf.mxu0 }
 0x318   : > { %v677_v6 = vadd.f32 %v1617_v39, %v676_v5 }
 0x31a   : > { %v710_v7 = vmax.f32 %v677_v6, 0.0 }
 0x31c   : > { %774 = vmatmul.f32.gmra.mxu1 %v710_v7 }
 0x31f   : > { %v679_v9 = vpop.f32.mrf.mxu0 }
 0x320   : > { %v680_v10 = vadd.f32 %v1617_v39, %v679_v9 }
 0x322   : > { %v711_v11 = vmax.f32 %v680_v10, 0.0 }
 0x324   : > { %777 = vmatmul.f32.gmra.mxu1 %v711_v11 }
 0x327   : > { %v682_v13 = vpop.f32.mrf.mxu0 }
 0x328   : > { %v683_v14 = vadd.f32 %v1617_v39, %v682_v13 }
 0x32a   : > { %v712_v15 = vmax.f32 %v683_v14, 0.0 }
 0x32c   : > { %780 = vmatmul.f32.gmra.mxu1 %v712_v15 }
 0x32f   : > { %v685_v17 = vpop.f32.mrf.mxu0 }
 0x330   : > { %v686_v18 = vadd.f32 %v1617_v39, %v685_v17 }
 0x332   : > { %v713_v19 = vmax.f32 %v686_v18, 0.0 }
 0x334   : > { %783 = vmatmul.f32.gmra.mxu1 %v713_v19 }
 0x337   : > { %v688_v21 = vpop.f32.mrf.mxu0 }
 0x338   : > { %v689_v22 = vadd.f32 %v1617_v39, %v688_v21 }
 0x33a   : > { %v714_v23 = vmax.f32 %v689_v22, 0.0 }
 0x33c   : > { %786 = vmatmul.f32.gmra.mxu1 %v714_v23 }
 0x33f   : > { %v691_v25 = vpop.f32.mrf.mxu0 }
 0x340   : > { %v692_v26 = vadd.f32 %v1617_v39, %v691_v25  ;;  %v917_v25 = vld [vmem:[#allocation5 + $0x380] sm:$0xff] }
 0x341   : > { %950 = vmatpush.msrb.mxu3 %v917_v25 }
 0x342   : > { %v715_v27 = vmax.f32 %v692_v26, 0.0 }
 0x344   : > { %789 = vmatmul.f32.gmra.mxu1 %v715_v27 }
 0x347   : > { %v694_v28 = vpop.f32.mrf.mxu0 }
 0x348   : > { %v695_v29 = vadd.f32 %v1617_v39, %v694_v28 }
 0x34a   : > { %v716_v30 = vmax.f32 %v695_v29, 0.0 }
 0x34c   : > { %792 = vmatmul.f32.gmra.mxu1 %v716_v30 }
 0x34f   : > { %v697_v32 = vpop.f32.mrf.mxu0 }
 0x350   : > { %v698_v33 = vadd.f32 %v1617_v39, %v697_v32 }
 0x352   : > { %v717_v34 = vmax.f32 %v698_v33, 0.0 }
 0x354   : > { %795 = vmatmul.f32.gmra.mxu1 %v717_v34 }
 0x357   : > { %v700_v36 = vpop.f32.mrf.mxu0 }
 0x358   : > { %v701_v37 = vadd.f32 %v1617_v39, %v700_v36 }
 0x35a   : > { %v718_v38 = vmax.f32 %v701_v37, 0.0 }
 0x35c   : > { %798 = vmatmul.f32.gmra.mxu1 %v718_v38  ;;  %v1221_v38 = vld [vmem:[#allocation7 + $0x6] ss:$0 sm:$0xff] }
 0x361   : > { %v754_v42 = vpop.f32.mrf.mxu1 }
 0x362   : > { %v755_v43 = vadd.f32 %v1635_v40, %v754_v42 }
 0x364   : > { %v802_v44 = vmax.f32 %v755_v43, 0.0 }
 0x366   : > { %852 = vmatmul.f32.vlgmr.msrb.gmra.mxu2 %v802_v44 }
 0x369   : > { %v757_v46 = vpop.f32.mrf.mxu1 }
 0x36a   : > { %v758_v47 = vadd.f32 %v1635_v40, %v757_v46 }
 0x36c   : > { %v803_v49 = vmax.f32 %v758_v47, 0.0 }
 0x36e   : > { %855 = vmatmul.f32.gmra.mxu2 %v803_v49 }
 0x371   : > { %v760_v39 = vpop.f32.mrf.mxu1 }
 0x372   : > { %v761_v52 = vadd.f32 %v1635_v40, %v760_v39 }
 0x374   : > { %v804_v53 = vmax.f32 %v761_v52, 0.0 }
 0x376   : > { %858 = vmatmul.f32.gmra.mxu2 %v804_v53 }
 0x379   : > { %v763_v56 = vpop.f32.mrf.mxu1 }
 0x37a   : > { %v764_v57 = vadd.f32 %v1635_v40, %v763_v56 }
 0x37c   : > { %v805_v58 = vmax.f32 %v764_v57, 0.0 }
 0x37e   : > { %861 = vmatmul.f32.gmra.mxu2 %v805_v58 }
 0x381   : > { %v766_v48 = vpop.f32.mrf.mxu1 }
 0x382   : > { %v767_v60 = vadd.f32 %v1635_v40, %v766_v48 }
 0x384   : > { %v806_v61 = vmax.f32 %v767_v60, 0.0 }
 0x386   : > { %864 = vmatmul.f32.gmra.mxu2 %v806_v61 }
 0x389   : > { %v769_v62 = vpop.f32.mrf.mxu1 }
 0x38a   : > { %v770_v55 = vadd.f32 %v1635_v40, %v769_v62 }
 0x38c   : > { %v807_v63 = vmax.f32 %v770_v55, 0.0 }
 0x38e   : > { %867 = vmatmul.f32.gmra.mxu2 %v807_v63 }
 0x391   : > { %v772_v1 = vpop.f32.mrf.mxu1 }
 0x392   : > { %v773_v2 = vadd.f32 %v1635_v40, %v772_v1 }
 0x394   : > { %v808_v3 = vmax.f32 %v773_v2, 0.0 }
 0x396   : > { %870 = vmatmul.f32.gmra.mxu2 %v808_v3 }
 0x399   : > { %v775_v5 = vpop.f32.mrf.mxu1 }
 0x39a   : > { %v776_v6 = vadd.f32 %v1635_v40, %v775_v5 }
 0x39c   : > { %v809_v7 = vmax.f32 %v776_v6, 0.0 }
 0x39e   : > { %873 = vmatmul.f32.gmra.mxu2 %v809_v7 }
 0x3a1   : > { %v778_v9 = vpop.f32.mrf.mxu1 }
 0x3a2   : > { %v779_v10 = vadd.f32 %v1635_v40, %v778_v9 }
 0x3a4   : > { %v810_v11 = vmax.f32 %v779_v10, 0.0 }
 0x3a6   : > { %876 = vmatmul.f32.gmra.mxu2 %v810_v11 }
 0x3a9   : > { %v781_v13 = vpop.f32.mrf.mxu1 }
 0x3aa   : > { %v782_v14 = vadd.f32 %v1635_v40, %v781_v13 }
 0x3ac   : > { %v811_v15 = vmax.f32 %v782_v14, 0.0 }
 0x3ae   : > { %879 = vmatmul.f32.gmra.mxu2 %v811_v15 }
 0x3b1   : > { %v784_v17 = vpop.f32.mrf.mxu1 }
 0x3b2   : > { %v785_v18 = vadd.f32 %v1635_v40, %v784_v17 }
 0x3b4   : > { %v812_v19 = vmax.f32 %v785_v18, 0.0 }
 0x3b6   : > { %882 = vmatmul.f32.gmra.mxu2 %v812_v19 }
 0x3b9   : > { %v787_v21 = vpop.f32.mrf.mxu1 }
 0x3ba   : > { %v788_v22 = vadd.f32 %v1635_v40, %v787_v21 }
 0x3bc   : > { %v813_v23 = vmax.f32 %v788_v22, 0.0 }
 0x3be   : > { %885 = vmatmul.f32.gmra.mxu2 %v813_v23  ;;  %v1222_v23 = vld [vmem:[#allocation7 + $0x7] ss:$0 sm:$0xff] }
 0x3c1   : > { %v790_v26 = vpop.f32.mrf.mxu1 }
 0x3c2   : > { %v791_v27 = vadd.f32 %v1635_v40, %v790_v26 }
 0x3c4   : > { %v814_v28 = vmax.f32 %v791_v27, 0.0 }
 0x3c6   : > { %888 = vmatmul.f32.gmra.mxu2 %v814_v28 }
 0x3c9   : > { %v793_v29 = vpop.f32.mrf.mxu1 }
 0x3ca   : > { %v794_v30 = vadd.f32 %v1635_v40, %v793_v29 }
 0x3cc   : > { %v815_v31 = vmax.f32 %v794_v30, 0.0 }
 0x3ce   : > { %891 = vmatmul.f32.gmra.mxu2 %v815_v31 }
 0x3d1   : > { %v796_v32 = vpop.f32.mrf.mxu1 }
 0x3d2   : > { %v797_v33 = vadd.f32 %v1635_v40, %v796_v32 }
 0x3d4   : > { %v816_v34 = vmax.f32 %v797_v33, 0.0 }
 0x3d6   : > { %894 = vmatmul.f32.gmra.mxu2 %v816_v34 }
 0x3d9   : > { %v799_v35 = vpop.f32.mrf.mxu1 }
 0x3da   : > { %v800_v36 = vadd.f32 %v1635_v40, %v799_v35 }
 0x3dc   : > { %v817_v37 = vmax.f32 %v800_v36, 0.0 }
 0x3de   : > { %897 = vmatmul.f32.gmra.mxu2 %v817_v37 }
 0x3e9   : > { %v853_v41 = vpop.f32.mrf.mxu2 }
 0x3ea   : > { %v854_v42 = vadd.f32 %v1221_v38, %v853_v41 }
 0x3ec   : > { %v901_v43 = vmax.f32 %v854_v42, 0.0 }
 0x3ee   : > { %951 = vmatmul.f32.vlgmr.msrb.gmra.mxu3 %v901_v43 }
 0x3f1   : > { %v856_v44 = vpop.f32.mrf.mxu2 }
 0x3f2   : > { %v857_v45 = vadd.f32 %v1221_v38, %v856_v44 }
 0x3f4   : > { %v902_v46 = vmax.f32 %v857_v45, 0.0 }
 0x3f6   : > { %954 = vmatmul.f32.gmra.mxu3 %v902_v46 }
 0x3f9   : > { %v859_v47 = vpop.f32.mrf.mxu2 }
 0x3fa   : > { %v860_v49 = vadd.f32 %v1221_v38, %v859_v47 }
 0x3fc   : > { %v903_v51 = vmax.f32 %v860_v49, 0.0 }
 0x3fe   : > { %957 = vmatmul.f32.gmra.mxu3 %v903_v51 }
 0x401   : > { %v862_v39 = vpop.f32.mrf.mxu2 }
 0x402   : > { %v863_v52 = vadd.f32 %v1221_v38, %v862_v39 }
 0x404   : > { %v904_v53 = vmax.f32 %v863_v52, 0.0 }
 0x406   : > { %960 = vmatmul.f32.gmra.mxu3 %v904_v53 }
 0x409   : > { %v865_v40 = vpop.f32.mrf.mxu2 }
 0x40a   : > { %v866_v54 = vadd.f32 %v1221_v38, %v865_v40 }
 0x40c   : > { %v905_v56 = vmax.f32 %v866_v54, 0.0 }
 0x40e   : > { %963 = vmatmul.f32.gmra.mxu3 %v905_v56 }
 0x411   : > { %v868_v57 = vpop.f32.mrf.mxu2 }
 0x412   : > { %v869_v58 = vadd.f32 %v1221_v38, %v868_v57 }
 0x414   : > { %v906_v59 = vmax.f32 %v869_v58, 0.0 }
 0x416   : > { %966 = vmatmul.f32.gmra.mxu3 %v906_v59 }
 0x419   : > { %v871_v48 = vpop.f32.mrf.mxu2 }
 0x41a   : > { %v872_v60 = vadd.f32 %v1221_v38, %v871_v48 }
 0x41c   : > { %v907_v61 = vmax.f32 %v872_v60, 0.0 }
 0x41e   : > { %969 = vmatmul.f32.gmra.mxu3 %v907_v61 }
 0x421   : > { %v874_v50 = vpop.f32.mrf.mxu2 }
 0x422   : > { %v875_v62 = vadd.f32 %v1221_v38, %v874_v50 }
 0x424   : > { %v908_v55 = vmax.f32 %v875_v62, 0.0 }
 0x426   : > { %972 = vmatmul.f32.gmra.mxu3 %v908_v55 }
 0x429   : > { %v877_v63 = vpop.f32.mrf.mxu2 }
 0x42a   : > { %v878_v0 = vadd.f32 %v1221_v38, %v877_v63 }
 0x42c   : > { %v909_v1 = vmax.f32 %v878_v0, 0.0 }
 0x42e   : > { %975 = vmatmul.f32.gmra.mxu3 %v909_v1 }
 0x431   : > { %v880_v2 = vpop.f32.mrf.mxu2 }
 0x432   : > { %v881_v3 = vadd.f32 %v1221_v38, %v880_v2 }
 0x434   : > { %v910_v4 = vmax.f32 %v881_v3, 0.0 }
 0x436   : > { %978 = vmatmul.f32.gmra.mxu3 %v910_v4 }
 0x439   : > { %v883_v5 = vpop.f32.mrf.mxu2 }
 0x43a   : > { %v884_v6 = vadd.f32 %v1221_v38, %v883_v5 }
 0x43c   : > { %v911_v7 = vmax.f32 %v884_v6, 0.0 }
 0x43e   : > { %981 = vmatmul.f32.gmra.mxu3 %v911_v7 }
 0x441   : > { %v886_v8 = vpop.f32.mrf.mxu2 }
 0x442   : > { %v887_v9 = vadd.f32 %v1221_v38, %v886_v8 }
 0x444   : > { %v912_v10 = vmax.f32 %v887_v9, 0.0 }
 0x446   : > { %984 = vmatmul.f32.gmra.mxu3 %v912_v10 }
 0x449   : > { %v889_v11 = vpop.f32.mrf.mxu2 }
 0x44a   : > { %v890_v12 = vadd.f32 %v1221_v38, %v889_v11 }
 0x44c   : > { %v913_v13 = vmax.f32 %v890_v12, 0.0 }
 0x44e   : > { %987 = vmatmul.f32.gmra.mxu3 %v913_v13 }
 0x451   : > { %v892_v14 = vpop.f32.mrf.mxu2 }
 0x452   : > { %v893_v15 = vadd.f32 %v1221_v38, %v892_v14 }
 0x454   : > { %v914_v16 = vmax.f32 %v893_v15, 0.0 }
 0x456   : > { %990 = vmatmul.f32.gmra.mxu3 %v914_v16 }
 0x459   : > { %v895_v17 = vpop.f32.mrf.mxu2 }
 0x45a   : > { %v896_v18 = vadd.f32 %v1221_v38, %v895_v17 }
 0x45c   : > { %v915_v19 = vmax.f32 %v896_v18, 0.0 }
 0x45e   : > { %993 = vmatmul.f32.gmra.mxu3 %v915_v19 }
 0x461   : > { %v898_v20 = vpop.f32.mrf.mxu2 }
 0x462   : > { %v899_v21 = vadd.f32 %v1221_v38, %v898_v20 }
 0x464   : > { %v916_v22 = vmax.f32 %v899_v21, 0.0 }
 0x466   : > { %996 = vmatmul.f32.gmra.mxu3 %v916_v22 }
 0x471   : > { %v952_v24 = vpop.f32.mrf.mxu3 }
 0x472   : > { %v953_v25 = vadd.f32 %v1222_v23, %v952_v24 }
 0x474   : > { %1000 = vst [vmem:[%s1655_s18] sm:$0xff] %v953_v25 }
 0x479   : > { %v955_v26 = vpop.f32.mrf.mxu3 }
 0x47a   : > { %v956_v27 = vadd.f32 %v1222_v23, %v955_v26 }
 0x47c   : > { %1001 = vst [vmem:[%s1655_s18 + $0x8] sm:$0xff] %v956_v27 }
 0x481   : > { %v958_v28 = vpop.f32.mrf.mxu3 }
 0x482   : > { %v959_v29 = vadd.f32 %v1222_v23, %v958_v28 }
 0x484   : > { %1002 = vst [vmem:[%s1655_s18 + $0x10] sm:$0xff] %v959_v29 }
 0x489   : > { %v961_v30 = vpop.f32.mrf.mxu3 }
 0x48a   : > { %v962_v31 = vadd.f32 %v1222_v23, %v961_v30 }
 0x48c   : > { %1003 = vst [vmem:[%s1655_s18 + $0x18] sm:$0xff] %v962_v31 }
 0x491   : > { %v964_v32 = vpop.f32.mrf.mxu3 }
 0x492   : > { %v965_v33 = vadd.f32 %v1222_v23, %v964_v32 }
 0x494   : > { %1004 = vst [vmem:[%s1655_s18 + $0x20] sm:$0xff] %v965_v33 }
 0x499   : > { %v967_v34 = vpop.f32.mrf.mxu3 }
 0x49a   : > { %v968_v35 = vadd.f32 %v1222_v23, %v967_v34 }
 0x49c   : > { %1005 = vst [vmem:[%s1655_s18 + $0x28] sm:$0xff] %v968_v35 }
 0x4a1   : > { %v970_v36 = vpop.f32.mrf.mxu3 }
 0x4a2   : > { %v971_v37 = vadd.f32 %v1222_v23, %v970_v36 }
 0x4a4   : > { %1006 = vst [vmem:[%s1655_s18 + $0x30] sm:$0xff] %v971_v37 }
 0x4a9   : > { %v973_v38 = vpop.f32.mrf.mxu3 }
 0x4aa   : > { %v974_v41 = vadd.f32 %v1222_v23, %v973_v38 }
 0x4ac   : > { %1007 = vst [vmem:[%s1655_s18 + $0x38] sm:$0xff] %v974_v41 }
 0x4b1   : > { %v976_v42 = vpop.f32.mrf.mxu3 }
 0x4b2   : > { %v977_v43 = vadd.f32 %v1222_v23, %v976_v42 }
 0x4b4   : > { %1008 = vst [vmem:[%s1655_s18 + $0x40] sm:$0xff] %v977_v43 }
 0x4b9   : > { %v979_v44 = vpop.f32.mrf.mxu3 }
 0x4ba   : > { %v980_v45 = vadd.f32 %v1222_v23, %v979_v44 }
 0x4bc   : > { %1009 = vst [vmem:[%s1655_s18 + $0x48] sm:$0xff] %v980_v45 }
 0x4c1   : > { %v982_v46 = vpop.f32.mrf.mxu3 }
 0x4c2   : > { %v983_v47 = vadd.f32 %v1222_v23, %v982_v46 }
 0x4c4   : > { %1010 = vst [vmem:[%s1655_s18 + $0x50] sm:$0xff] %v983_v47 }
 0x4c9   : > { %v985_v49 = vpop.f32.mrf.mxu3 }
 0x4ca   : > { %v986_v51 = vadd.f32 %v1222_v23, %v985_v49 }
 0x4cc   : > { %1011 = vst [vmem:[%s1655_s18 + $0x58] sm:$0xff] %v986_v51 }
 0x4d1   : > { %v988_v39 = vpop.f32.mrf.mxu3 }
 0x4d2   : > { %v989_v52 = vadd.f32 %v1222_v23, %v988_v39 }
 0x4d4   : > { %1012 = vst [vmem:[%s1655_s18 + $0x60] sm:$0xff] %v989_v52 }
 0x4d9   : > { %v991_v53 = vpop.f32.mrf.mxu3 }
 0x4da   : > { %v992_v40 = vadd.f32 %v1222_v23, %v991_v53 }
 0x4dc   : > { %1013 = vst [vmem:[%s1655_s18 + $0x68] sm:$0xff] %v992_v40 }
 0x4e1   : > { %v994_v54 = vpop.f32.mrf.mxu3 }
 0x4e2   : > { %v995_v56 = vadd.f32 %v1222_v23, %v994_v54 }
 0x4e4   : > { %1014 = vst [vmem:[%s1655_s18 + $0x70] sm:$0xff] %v995_v56 }
 0x4e9   : > { %v997_v57 = vpop.f32.mrf.mxu3 }
 0x4ea   : > { %v998_v58 = vadd.f32 %v1222_v23, %v997_v57 }
 0x4ec   : > { %1015 = vst [vmem:[%s1655_s18 + $0x78] sm:$0xff] %v998_v58 }
 0x4ed   : > { %1340 = shalt.err (!%p1337_p10)
}
 0x4ee   : > { %s1389_s11 = smov 128   ;;  %s1390_s24 = smov 8  }
 0x4ef   : > { %1154 = dma.vmem_to_hbm [thread:$0]  (%p1480_p3), %s1030_s27, 2048, %s1032_s28, %s1017_s4, %s1389_s11, %s1389_s11, %s1390_s24  }
 0x4f0 PF: > { %s1046_s25 = sand.u32 1, %s1371_s12   ;;  %p1716_p12 = scmp.ge.s32.totalorder %s1383_s15, 2 }
 0x4f1   : > { %s1047_s5 = scalar_lea.sflag [#allocation4], %s1046_s25 }
 0x4f2   : > { %p1168_p13 = pnand %p1716_p12, %p1446_p6 }
 0x4f4   : > { %p1169_p0 = pneg %p1168_p13 }
 0x4f6   : > { %1366 = dma.done.wait (%p1169_p0), %s1047_s5, 2048  }
 0x4f7   : > { %1368 = vsyncadd (%p1169_p0), %s1047_s5, 4294965248  ;;  %p17_p5 = scmp.ge.s32.totalorder %s1470_s6, 4   ;;  %s1717_s12 = smov %s1375_s13 }
 0x4f8   : > { %s1718_s13 = smov %s1379_s14  ;;  %s1719_s14 = smov %s1486_s10 }
 0x4f9   : > { %s1720_s15 = smov %s1470_s6  ;;  %19 = sbr.rel (!%p17_p5) target bundleno = 6 (0x6), region = 85 }
 0x4fe   :  { %1053 = vsyncpa [#allocation3], 1 }
 0x4ff   :  { %1055 = vsyncpa [#allocation3 + $0x1], 1 }
 0x500   :  { %1056 = vsyncpa [#allocation6], 1 }
 0x501   :  { %1057 = vsyncpa [#allocation4], 1 }
 0x502   :  { %1059 = vsyncpa [#allocation4 + $0x1], 1 }

</bundles_post_ra>
